<compile_context>
chip_gen: v6e
topology: v6e:2x2x1
jax: 0.10.0
libtpu: 0.0.40
codegen_flags: <defaults>
</compile_context>

<pallas_src>
import jax
import jax.numpy as jnp
from jax.experimental import pallas as pl
from jax.experimental.pallas import tpu as pltpu

# The reference code uses undefined globals WAR_BUCKETS / LEVEL_BUCKETS /
# PA_BUCKETS; pick small deterministic sizes for them.
WAR_BUCKETS = tuple(range(8))
LEVEL_BUCKETS = tuple(range(5))
PA_BUCKETS = tuple(range(6))

_LANE = 128


def _round_up(x, m):
    return ((x + m - 1) // m) * m


# --------------------------- Fused forward kernel ----------------------------
def _build_fused_kernel(num_layers, T, B, H):
    """All LSTM layers + length mask + fused heads in one kernel body."""

    def kernel(*refs):
        x_ref, mask_ref = refs[0], refs[1]
        o_ref = refs[-1]
        idx = 2

        acts = x_ref[...]                                  # (T*B, D_in) f32, time-major-flat
        for _layer in range(num_layers):
            wih = refs[idx][...]                           # (D_in, 4H) bf16
            whh = refs[idx + 1][...]                       # (H, 4H)    bf16
            b = refs[idx + 2][...]                         # (1, 4H)    f32  (b_ih + b_hh)
            idx += 3

            # Hoisted input projection for all timesteps: one MXU-friendly matmul.
            xp = jnp.dot(acts.astype(jnp.bfloat16), wih,
                         preferred_element_type=jnp.float32) + b      # (T*B, 4H) f32

            h = jnp.zeros((B, H), jnp.float32)
            c = jnp.zeros((B, H), jnp.float32)
            hs = []
            for t in range(T):                             # static unroll (T is small)
                g_pre = xp[t * B:(t + 1) * B, :] + jnp.dot(
                    h.astype(jnp.bfloat16), whh,
                    preferred_element_type=jnp.float32)                 # (B, 4H)
                # PyTorch gate order: i, f, g, o
                i_g = jax.nn.sigmoid(g_pre[:, 0:H])
                f_g = jax.nn.sigmoid(g_pre[:, H:2 * H])
                g_g = jnp.tanh(g_pre[:, 2 * H:3 * H])
                o_g = jax.nn.sigmoid(g_pre[:, 3 * H:4 * H])
                c = f_g * c + i_g * g_g
                h = o_g * jnp.tanh(c)
                hs.append(h)
            acts = jnp.concatenate(hs, axis=0)             # (T*B, H) time-major-flat

        # pad_packed_sequence: zero-fill padded timesteps of the LSTM output
        # BEFORE the heads (heads then see zeros there, like PyTorch).
        masked = acts * mask_ref[...]                      # (T*B, H) * (T*B, 1)

        w1 = refs[idx][...]                                # (H, HID_PAD)    bf16
        b1 = refs[idx + 1][...]                            # (1, HID_PAD)    f32
        w2 = refs[idx + 2][...]                            # (HID_PAD, N_PAD) bf16 (block-diag)
        b2 = refs[idx + 3][...]                            # (1, N_PAD)      f32

        hid = jnp.dot(masked.astype(jnp.bfloat16), w1,
                      preferred_element_type=jnp.float32) + b1
        hid = jnp.where(hid >= 0, hid, 0.01 * hid)         # F.leaky_relu, default slope 0.01
        o_ref[...] = jnp.dot(hid.astype(jnp.bfloat16), w2,
                             preferred_element_type=jnp.float32) + b2   # (T*B, N_PAD)

    return kernel


# --------------------------- Parameter construction --------------------------
def init_params(key, input_size, num_layers, hidden_size):
    """Deterministic synthetic init, pre-fused into the kernel's layouts."""
    bound = 1.0 / (hidden_size ** 0.5)

    def unif(k, shape):
        return jax.random.uniform(k, shape, jnp.float32, -bound, bound)

    keys = iter(jax.random.split(key, 4 * num_layers + 16))
    H = hidden_size
    hm = H // 2

    lstm = []
    d_in = input_size
    for _ in range(num_layers):
        wih = unif(next(keys), (d_in, 4 * H))              # gate order i, f, g, o
        whh = unif(next(keys), (H, 4 * H))
        bih = unif(next(keys), (1, 4 * H))
        bhh = unif(next(keys), (1, 4 * H))
        lstm.append((wih.astype(jnp.bfloat16), whh.astype(jnp.bfloat16), bih + bhh))
        d_in = H

    n_outs = (len(WAR_BUCKETS), len(LEVEL_BUCKETS), len(PA_BUCKETS))
    hid_pad = _round_up(len(n_outs) * hm, _LANE)           # fused hidden width, lane-dense
    n_pad = _round_up(sum(n_outs), _LANE)                  # fused output width, lane-dense

    w1cat = jnp.zeros((H, hid_pad), jnp.float32)
    b1cat = jnp.zeros((1, hid_pad), jnp.float32)
    w2blk = jnp.zeros((hid_pad, n_pad), jnp.float32)       # block-diagonal second layer
    b2pad = jnp.zeros((1, n_pad), jnp.float32)
    slices = []
    off = 0
    for i, n_out in enumerate(n_outs):
        w1 = unif(next(keys), (H, hm))
        b1 = unif(next(keys), (1, hm))
        w2 = unif(next(keys), (hm, n_out))
        b2 = unif(next(keys), (1, n_out))
        w1cat = w1cat.at[:, i * hm:(i + 1) * hm].set(w1)
        b1cat = b1cat.at[:, i * hm:(i + 1) * hm].set(b1)
        w2blk = w2blk.at[i * hm:(i + 1) * hm, off:off + n_out].set(w2)
        b2pad = b2pad.at[:, off:off + n_out].set(b2)
        slices.append((off, off + n_out))
        off += n_out

    return {
        "lstm": lstm,
        "head": (w1cat.astype(jnp.bfloat16), b1cat,
                 w2blk.astype(jnp.bfloat16), b2pad),
        "slices": tuple(slices),
        "hidden_size": H,
        "n_pad": n_pad,
    }


# ------------------------------ Model forward --------------------------------
def lstm_model_forward(params, x_btd, lengths, t_out=None):
    """Eval-mode forward of LSTM_Model.

    x_btd: (B, T, input_size) batch-first; lengths: (B,) int.
    Returns (out_war, out_level, out_pa), each (B, t_out, n_buckets).
    """
    # TODO(synk): training-only path (`x += mutators[...]`, inter-layer dropout)
    # is intentionally omitted (self.training == False).
    B, T, D = x_btd.shape
    H = params["hidden_size"]
    n_pad = params["n_pad"]
    num_layers = len(params["lstm"])
    if t_out is None:
        # TODO(synk): pad_packed_sequence truncates to max(lengths); we keep the
        # static T (pass t_out explicitly if a shorter static length is known)
        # to stay jit-able without a device->host sync.
        t_out = T

    # Tiny layout plumbing (fused under jit): time-major-flat input + length mask.
    x_flat = jnp.transpose(x_btd, (1, 0, 2)).reshape(T * B, D)
    mask = (jnp.arange(T)[:, None] < lengths[None, :]).astype(jnp.float32)
    mask = mask.reshape(T * B, 1)

    flat_w = []
    for (wih, whh, b) in params["lstm"]:
        flat_w += [wih, whh, b]
    flat_w += list(params["head"])

    kernel = _build_fused_kernel(num_layers, T, B, H)
    n_in = 2 + len(flat_w)
    y = pl.pallas_call(
        kernel,
        out_shape=jax.ShapeDtypeStruct((T * B, n_pad), jnp.float32),
        in_specs=[pl.BlockSpec(memory_space=pltpu.MemorySpace.VMEM)] * n_in,
        out_specs=pl.BlockSpec(memory_space=pltpu.MemorySpace.VMEM),
    )(x_flat, mask, *flat_w)

    y = y.reshape(T, B, n_pad).transpose(1, 0, 2)[:, :t_out, :]   # (B, t_out, N_PAD)
    return tuple(y[..., s:e] for (s, e) in params["slices"])


if __name__ == "__main__":
    input_size, num_layers, hidden_size = 16, 2, 32
    B, T = 2, 8

    key = jax.random.PRNGKey(0)
    kx, kp = jax.random.split(key)
    x = jax.random.normal(kx, (B, T, input_size), jnp.float32)
    lengths = jnp.array([T, 5], dtype=jnp.int32)

    params = init_params(kp, input_size, num_layers, hidden_size)

    fwd = jax.jit(lambda xx, ll: lstm_model_forward(params, xx, ll))
    out_war, out_level, out_pa = fwd(x, lengths)
    jax.block_until_ready((out_war, out_level, out_pa))

    assert out_war.shape == (B, T, len(WAR_BUCKETS))
    assert out_level.shape == (B, T, len(LEVEL_BUCKETS))
    assert out_pa.shape == (B, T, len(PA_BUCKETS))
    print("KERNEL_OK")
</pallas_src>

<mosaic_0001>
module attributes {stable_mosaic.version = 11 : i64} {
  func.func @kernel(%arg0: memref<16x16xf32, #tpu.memory_space<vmem>>, %arg1: memref<16x1xf32, #tpu.memory_space<vmem>>, %arg2: memref<16x128xbf16, #tpu.memory_space<vmem>>, %arg3: memref<32x128xbf16, #tpu.memory_space<vmem>>, %arg4: memref<1x128xf32, #tpu.memory_space<vmem>>, %arg5: memref<32x128xbf16, #tpu.memory_space<vmem>>, %arg6: memref<32x128xbf16, #tpu.memory_space<vmem>>, %arg7: memref<1x128xf32, #tpu.memory_space<vmem>>, %arg8: memref<32x128xbf16, #tpu.memory_space<vmem>>, %arg9: memref<1x128xf32, #tpu.memory_space<vmem>>, %arg10: memref<128x128xbf16, #tpu.memory_space<vmem>>, %arg11: memref<1x128xf32, #tpu.memory_space<vmem>>, %arg12: memref<16x128xf32, #tpu.memory_space<vmem>>) attributes {dimension_semantics = [], scalar_prefetch = 0 : i64, scratch_operands = 0 : i64, tpu.core_type = #tpu.core_type<tc>} {
    %c0 = arith.constant 0 : index
    %c0_0 = arith.constant 0 : index
    %0 = vector.load %arg0[%c0, %c0_0] : memref<16x16xf32, #tpu.memory_space<vmem>>, vector<16x16xf32>
    %c0_1 = arith.constant 0 : index
    %c0_2 = arith.constant 0 : index
    %1 = vector.load %arg2[%c0_1, %c0_2] : memref<16x128xbf16, #tpu.memory_space<vmem>>, vector<16x128xbf16>
    %c0_3 = arith.constant 0 : index
    %c0_4 = arith.constant 0 : index
    %2 = vector.load %arg3[%c0_3, %c0_4] : memref<32x128xbf16, #tpu.memory_space<vmem>>, vector<32x128xbf16>
    %c0_5 = arith.constant 0 : index
    %c0_6 = arith.constant 0 : index
    %3 = vector.load %arg4[%c0_5, %c0_6] : memref<1x128xf32, #tpu.memory_space<vmem>>, vector<1x128xf32>
    %4 = arith.truncf %0 : vector<16x16xf32> to vector<16x16xbf16>
    %cst = arith.constant dense<0.000000e+00> : vector<16x128xf32>
    %5 = tpu.matmul %4, %1, %cst {dimension_numbers = #tpu.dot_dimension_numbers<[1], [0], [0], [1], [0, 0, 1, 1], [], []>} : vector<16x16xbf16>, vector<16x128xbf16>, vector<16x128xf32> -> vector<16x128xf32>
    %6 = vector.broadcast %3 : vector<1x128xf32> to vector<16x128xf32>
    %7 = arith.addf %5, %6 : vector<16x128xf32>
    %cst_7 = arith.constant 0.000000e+00 : f32
    %8 = vector.broadcast %cst_7 : f32 to vector<2x32xf32>
    %cst_8 = arith.constant 0.000000e+00 : f32
    %9 = vector.broadcast %cst_8 : f32 to vector<2x32xf32>
    %10 = vector.extract_strided_slice %7 {offsets = [0, 0], sizes = [2, 128], strides = [1, 1]} : vector<16x128xf32> to vector<2x128xf32>
    %11 = arith.truncf %8 : vector<2x32xf32> to vector<2x32xbf16>
    %cst_9 = arith.constant dense<0.000000e+00> : vector<2x128xf32>
    %12 = tpu.matmul %11, %2, %cst_9 {dimension_numbers = #tpu.dot_dimension_numbers<[1], [0], [0], [1], [0, 0, 1, 1], [], []>} : vector<2x32xbf16>, vector<32x128xbf16>, vector<2x128xf32> -> vector<2x128xf32>
    %13 = arith.addf %10, %12 : vector<2x128xf32>
    %14 = vector.extract_strided_slice %13 {offsets = [0, 0], sizes = [2, 32], strides = [1, 1]} : vector<2x128xf32> to vector<2x32xf32>
    %15 = arith.negf %14 : vector<2x32xf32>
    %16 = math.exp %15 : vector<2x32xf32>
    %cst_10 = arith.constant 1.000000e+00 : f32
    %17 = vector.broadcast %cst_10 : f32 to vector<2x32xf32>
    %18 = arith.addf %17, %16 : vector<2x32xf32>
    %19 = arith.divf %17, %18 : vector<2x32xf32>
    %20 = vector.extract_strided_slice %13 {offsets = [0, 32], sizes = [2, 32], strides = [1, 1]} : vector<2x128xf32> to vector<2x32xf32>
    %21 = arith.negf %20 : vector<2x32xf32>
    %22 = math.exp %21 : vector<2x32xf32>
    %cst_11 = arith.constant 1.000000e+00 : f32
    %23 = vector.broadcast %cst_11 : f32 to vector<2x32xf32>
    %24 = arith.addf %23, %22 : vector<2x32xf32>
    %25 = arith.divf %23, %24 : vector<2x32xf32>
    %26 = vector.extract_strided_slice %13 {offsets = [0, 64], sizes = [2, 32], strides = [1, 1]} : vector<2x128xf32> to vector<2x32xf32>
    %27 = math.tanh %26 : vector<2x32xf32>
    %28 = vector.extract_strided_slice %13 {offsets = [0, 96], sizes = [2, 32], strides = [1, 1]} : vector<2x128xf32> to vector<2x32xf32>
    %29 = arith.negf %28 : vector<2x32xf32>
    %30 = math.exp %29 : vector<2x32xf32>
    %cst_12 = arith.constant 1.000000e+00 : f32
    %31 = vector.broadcast %cst_12 : f32 to vector<2x32xf32>
    %32 = arith.addf %31, %30 : vector<2x32xf32>
    %33 = arith.divf %31, %32 : vector<2x32xf32>
    %34 = arith.mulf %25, %9 : vector<2x32xf32>
    %35 = arith.mulf %19, %27 : vector<2x32xf32>
    %36 = arith.addf %34, %35 : vector<2x32xf32>
    %37 = math.tanh %36 : vector<2x32xf32>
    %38 = arith.mulf %33, %37 : vector<2x32xf32>
    %39 = vector.extract_strided_slice %7 {offsets = [2, 0], sizes = [2, 128], strides = [1, 1]} : vector<16x128xf32> to vector<2x128xf32>
    %40 = arith.truncf %38 : vector<2x32xf32> to vector<2x32xbf16>
    %cst_13 = arith.constant dense<0.000000e+00> : vector<2x128xf32>
    %41 = tpu.matmul %40, %2, %cst_13 {dimension_numbers = #tpu.dot_dimension_numbers<[1], [0], [0], [1], [0, 0, 1, 1], [], []>} : vector<2x32xbf16>, vector<32x128xbf16>, vector<2x128xf32> -> vector<2x128xf32>
    %42 = arith.addf %39, %41 : vector<2x128xf32>
    %43 = vector.extract_strided_slice %42 {offsets = [0, 0], sizes = [2, 32], strides = [1, 1]} : vector<2x128xf32> to vector<2x32xf32>
    %44 = arith.negf %43 : vector<2x32xf32>
    %45 = math.exp %44 : vector<2x32xf32>
    %cst_14 = arith.constant 1.000000e+00 : f32
    %46 = vector.broadcast %cst_14 : f32 to vector<2x32xf32>
    %47 = arith.addf %46, %45 : vector<2x32xf32>
    %48 = arith.divf %46, %47 : vector<2x32xf32>
    %49 = vector.extract_strided_slice %42 {offsets = [0, 32], sizes = [2, 32], strides = [1, 1]} : vector<2x128xf32> to vector<2x32xf32>
    %50 = arith.negf %49 : vector<2x32xf32>
    %51 = math.exp %50 : vector<2x32xf32>
    %cst_15 = arith.constant 1.000000e+00 : f32
    %52 = vector.broadcast %cst_15 : f32 to vector<2x32xf32>
    %53 = arith.addf %52, %51 : vector<2x32xf32>
    %54 = arith.divf %52, %53 : vector<2x32xf32>
    %55 = vector.extract_strided_slice %42 {offsets = [0, 64], sizes = [2, 32], strides = [1, 1]} : vector<2x128xf32> to vector<2x32xf32>
    %56 = math.tanh %55 : vector<2x32xf32>
    %57 = vector.extract_strided_slice %42 {offsets = [0, 96], sizes = [2, 32], strides = [1, 1]} : vector<2x128xf32> to vector<2x32xf32>
    %58 = arith.negf %57 : vector<2x32xf32>
    %59 = math.exp %58 : vector<2x32xf32>
    %cst_16 = arith.constant 1.000000e+00 : f32
    %60 = vector.broadcast %cst_16 : f32 to vector<2x32xf32>
    %61 = arith.addf %60, %59 : vector<2x32xf32>
    %62 = arith.divf %60, %61 : vector<2x32xf32>
    %63 = arith.mulf %54, %36 : vector<2x32xf32>
    %64 = arith.mulf %48, %56 : vector<2x32xf32>
    %65 = arith.addf %63, %64 : vector<2x32xf32>
    %66 = math.tanh %65 : vector<2x32xf32>
    %67 = arith.mulf %62, %66 : vector<2x32xf32>
    %68 = vector.extract_strided_slice %7 {offsets = [4, 0], sizes = [2, 128], strides = [1, 1]} : vector<16x128xf32> to vector<2x128xf32>
    %69 = arith.truncf %67 : vector<2x32xf32> to vector<2x32xbf16>
    %cst_17 = arith.constant dense<0.000000e+00> : vector<2x128xf32>
    %70 = tpu.matmul %69, %2, %cst_17 {dimension_numbers = #tpu.dot_dimension_numbers<[1], [0], [0], [1], [0, 0, 1, 1], [], []>} : vector<2x32xbf16>, vector<32x128xbf16>, vector<2x128xf32> -> vector<2x128xf32>
    %71 = arith.addf %68, %70 : vector<2x128xf32>
    %72 = vector.extract_strided_slice %71 {offsets = [0, 0], sizes = [2, 32], strides = [1, 1]} : vector<2x128xf32> to vector<2x32xf32>
    %73 = arith.negf %72 : vector<2x32xf32>
    %74 = math.exp %73 : vector<2x32xf32>
    %cst_18 = arith.constant 1.000000e+00 : f32
    %75 = vector.broadcast %cst_18 : f32 to vector<2x32xf32>
    %76 = arith.addf %75, %74 : vector<2x32xf32>
    %77 = arith.divf %75, %76 : vector<2x32xf32>
    %78 = vector.extract_strided_slice %71 {offsets = [0, 32], sizes = [2, 32], strides = [1, 1]} : vector<2x128xf32> to vector<2x32xf32>
    %79 = arith.negf %78 : vector<2x32xf32>
    %80 = math.exp %79 : vector<2x32xf32>
    %cst_19 = arith.constant 1.000000e+00 : f32
    %81 = vector.broadcast %cst_19 : f32 to vector<2x32xf32>
    %82 = arith.addf %81, %80 : vector<2x32xf32>
    %83 = arith.divf %81, %82 : vector<2x32xf32>
    %84 = vector.extract_strided_slice %71 {offsets = [0, 64], sizes = [2, 32], strides = [1, 1]} : vector<2x128xf32> to vector<2x32xf32>
    %85 = math.tanh %84 : vector<2x32xf32>
    %86 = vector.extract_strided_slice %71 {offsets = [0, 96], sizes = [2, 32], strides = [1, 1]} : vector<2x128xf32> to vector<2x32xf32>
    %87 = arith.negf %86 : vector<2x32xf32>
    %88 = math.exp %87 : vector<2x32xf32>
    %cst_20 = arith.constant 1.000000e+00 : f32
    %89 = vector.broadcast %cst_20 : f32 to vector<2x32xf32>
    %90 = arith.addf %89, %88 : vector<2x32xf32>
    %91 = arith.divf %89, %90 : vector<2x32xf32>
    %92 = arith.mulf %83, %65 : vector<2x32xf32>
    %93 = arith.mulf %77, %85 : vector<2x32xf32>
    %94 = arith.addf %92, %93 : vector<2x32xf32>
    %95 = math.tanh %94 : vector<2x32xf32>
    %96 = arith.mulf %91, %95 : vector<2x32xf32>
    %97 = vector.extract_strided_slice %7 {offsets = [6, 0], sizes = [2, 128], strides = [1, 1]} : vector<16x128xf32> to vector<2x128xf32>
    %98 = arith.truncf %96 : vector<2x32xf32> to vector<2x32xbf16>
    %cst_21 = arith.constant dense<0.000000e+00> : vector<2x128xf32>
    %99 = tpu.matmul %98, %2, %cst_21 {dimension_numbers = #tpu.dot_dimension_numbers<[1], [0], [0], [1], [0, 0, 1, 1], [], []>} : vector<2x32xbf16>, vector<32x128xbf16>, vector<2x128xf32> -> vector<2x128xf32>
    %100 = arith.addf %97, %99 : vector<2x128xf32>
    %101 = vector.extract_strided_slice %100 {offsets = [0, 0], sizes = [2, 32], strides = [1, 1]} : vector<2x128xf32> to vector<2x32xf32>
    %102 = arith.negf %101 : vector<2x32xf32>
    %103 = math.exp %102 : vector<2x32xf32>
    %cst_22 = arith.constant 1.000000e+00 : f32
    %104 = vector.broadcast %cst_22 : f32 to vector<2x32xf32>
    %105 = arith.addf %104, %103 : vector<2x32xf32>
    %106 = arith.divf %104, %105 : vector<2x32xf32>
    %107 = vector.extract_strided_slice %100 {offsets = [0, 32], sizes = [2, 32], strides = [1, 1]} : vector<2x128xf32> to vector<2x32xf32>
    %108 = arith.negf %107 : vector<2x32xf32>
    %109 = math.exp %108 : vector<2x32xf32>
    %cst_23 = arith.constant 1.000000e+00 : f32
    %110 = vector.broadcast %cst_23 : f32 to vector<2x32xf32>
    %111 = arith.addf %110, %109 : vector<2x32xf32>
    %112 = arith.divf %110, %111 : vector<2x32xf32>
    %113 = vector.extract_strided_slice %100 {offsets = [0, 64], sizes = [2, 32], strides = [1, 1]} : vector<2x128xf32> to vector<2x32xf32>
    %114 = math.tanh %113 : vector<2x32xf32>
    %115 = vector.extract_strided_slice %100 {offsets = [0, 96], sizes = [2, 32], strides = [1, 1]} : vector<2x128xf32> to vector<2x32xf32>
    %116 = arith.negf %115 : vector<2x32xf32>
    %117 = math.exp %116 : vector<2x32xf32>
    %cst_24 = arith.constant 1.000000e+00 : f32
    %118 = vector.broadcast %cst_24 : f32 to vector<2x32xf32>
    %119 = arith.addf %118, %117 : vector<2x32xf32>
    %120 = arith.divf %118, %119 : vector<2x32xf32>
    %121 = arith.mulf %112, %94 : vector<2x32xf32>
    %122 = arith.mulf %106, %114 : vector<2x32xf32>
    %123 = arith.addf %121, %122 : vector<2x32xf32>
    %124 = math.tanh %123 : vector<2x32xf32>
    %125 = arith.mulf %120, %124 : vector<2x32xf32>
    %126 = vector.extract_strided_slice %7 {offsets = [8, 0], sizes = [2, 128], strides = [1, 1]} : vector<16x128xf32> to vector<2x128xf32>
    %127 = arith.truncf %125 : vector<2x32xf32> to vector<2x32xbf16>
    %cst_25 = arith.constant dense<0.000000e+00> : vector<2x128xf32>
    %128 = tpu.matmul %127, %2, %cst_25 {dimension_numbers = #tpu.dot_dimension_numbers<[1], [0], [0], [1], [0, 0, 1, 1], [], []>} : vector<2x32xbf16>, vector<32x128xbf16>, vector<2x128xf32> -> vector<2x128xf32>
    %129 = arith.addf %126, %128 : vector<2x128xf32>
    %130 = vector.extract_strided_slice %129 {offsets = [0, 0], sizes = [2, 32], strides = [1, 1]} : vector<2x128xf32> to vector<2x32xf32>
    %131 = arith.negf %130 : vector<2x32xf32>
    %132 = math.exp %131 : vector<2x32xf32>
    %cst_26 = arith.constant 1.000000e+00 : f32
    %133 = vector.broadcast %cst_26 : f32 to vector<2x32xf32>
    %134 = arith.addf %133, %132 : vector<2x32xf32>
    %135 = arith.divf %133, %134 : vector<2x32xf32>
    %136 = vector.extract_strided_slice %129 {offsets = [0, 32], sizes = [2, 32], strides = [1, 1]} : vector<2x128xf32> to vector<2x32xf32>
    %137 = arith.negf %136 : vector<2x32xf32>
    %138 = math.exp %137 : vector<2x32xf32>
    %cst_27 = arith.constant 1.000000e+00 : f32
    %139 = vector.broadcast %cst_27 : f32 to vector<2x32xf32>
    %140 = arith.addf %139, %138 : vector<2x32xf32>
    %141 = arith.divf %139, %140 : vector<2x32xf32>
    %142 = vector.extract_strided_slice %129 {offsets = [0, 64], sizes = [2, 32], strides = [1, 1]} : vector<2x128xf32> to vector<2x32xf32>
    %143 = math.tanh %142 : vector<2x32xf32>
    %144 = vector.extract_strided_slice %129 {offsets = [0, 96], sizes = [2, 32], strides = [1, 1]} : vector<2x128xf32> to vector<2x32xf32>
    %145 = arith.negf %144 : vector<2x32xf32>
    %146 = math.exp %145 : vector<2x32xf32>
    %cst_28 = arith.constant 1.000000e+00 : f32
    %147 = vector.broadcast %cst_28 : f32 to vector<2x32xf32>
    %148 = arith.addf %147, %146 : vector<2x32xf32>
    %149 = arith.divf %147, %148 : vector<2x32xf32>
    %150 = arith.mulf %141, %123 : vector<2x32xf32>
    %151 = arith.mulf %135, %143 : vector<2x32xf32>
    %152 = arith.addf %150, %151 : vector<2x32xf32>
    %153 = math.tanh %152 : vector<2x32xf32>
    %154 = arith.mulf %149, %153 : vector<2x32xf32>
    %155 = vector.extract_strided_slice %7 {offsets = [10, 0], sizes = [2, 128], strides = [1, 1]} : vector<16x128xf32> to vector<2x128xf32>
    %156 = arith.truncf %154 : vector<2x32xf32> to vector<2x32xbf16>
    %cst_29 = arith.constant dense<0.000000e+00> : vector<2x128xf32>
    %157 = tpu.matmul %156, %2, %cst_29 {dimension_numbers = #tpu.dot_dimension_numbers<[1], [0], [0], [1], [0, 0, 1, 1], [], []>} : vector<2x32xbf16>, vector<32x128xbf16>, vector<2x128xf32> -> vector<2x128xf32>
    %158 = arith.addf %155, %157 : vector<2x128xf32>
    %159 = vector.extract_strided_slice %158 {offsets = [0, 0], sizes = [2, 32], strides = [1, 1]} : vector<2x128xf32> to vector<2x32xf32>
    %160 = arith.negf %159 : vector<2x32xf32>
    %161 = math.exp %160 : vector<2x32xf32>
    %cst_30 = arith.constant 1.000000e+00 : f32
    %162 = vector.broadcast %cst_30 : f32 to vector<2x32xf32>
    %163 = arith.addf %162, %161 : vector<2x32xf32>
    %164 = arith.divf %162, %163 : vector<2x32xf32>
    %165 = vector.extract_strided_slice %158 {offsets = [0, 32], sizes = [2, 32], strides = [1, 1]} : vector<2x128xf32> to vector<2x32xf32>
    %166 = arith.negf %165 : vector<2x32xf32>
    %167 = math.exp %166 : vector<2x32xf32>
    %cst_31 = arith.constant 1.000000e+00 : f32
    %168 = vector.broadcast %cst_31 : f32 to vector<2x32xf32>
    %169 = arith.addf %168, %167 : vector<2x32xf32>
    %170 = arith.divf %168, %169 : vector<2x32xf32>
    %171 = vector.extract_strided_slice %158 {offsets = [0, 64], sizes = [2, 32], strides = [1, 1]} : vector<2x128xf32> to vector<2x32xf32>
    %172 = math.tanh %171 : vector<2x32xf32>
    %173 = vector.extract_strided_slice %158 {offsets = [0, 96], sizes = [2, 32], strides = [1, 1]} : vector<2x128xf32> to vector<2x32xf32>
    %174 = arith.negf %173 : vector<2x32xf32>
    %175 = math.exp %174 : vector<2x32xf32>
    %cst_32 = arith.constant 1.000000e+00 : f32
    %176 = vector.broadcast %cst_32 : f32 to vector<2x32xf32>
    %177 = arith.addf %176, %175 : vector<2x32xf32>
    %178 = arith.divf %176, %177 : vector<2x32xf32>
    %179 = arith.mulf %170, %152 : vector<2x32xf32>
    %180 = arith.mulf %164, %172 : vector<2x32xf32>
    %181 = arith.addf %179, %180 : vector<2x32xf32>
    %182 = math.tanh %181 : vector<2x32xf32>
    %183 = arith.mulf %178, %182 : vector<2x32xf32>
    %184 = vector.extract_strided_slice %7 {offsets = [12, 0], sizes = [2, 128], strides = [1, 1]} : vector<16x128xf32> to vector<2x128xf32>
    %185 = arith.truncf %183 : vector<2x32xf32> to vector<2x32xbf16>
    %cst_33 = arith.constant dense<0.000000e+00> : vector<2x128xf32>
    %186 = tpu.matmul %185, %2, %cst_33 {dimension_numbers = #tpu.dot_dimension_numbers<[1], [0], [0], [1], [0, 0, 1, 1], [], []>} : vector<2x32xbf16>, vector<32x128xbf16>, vector<2x128xf32> -> vector<2x128xf32>
    %187 = arith.addf %184, %186 : vector<2x128xf32>
    %188 = vector.extract_strided_slice %187 {offsets = [0, 0], sizes = [2, 32], strides = [1, 1]} : vector<2x128xf32> to vector<2x32xf32>
    %189 = arith.negf %188 : vector<2x32xf32>
    %190 = math.exp %189 : vector<2x32xf32>
    %cst_34 = arith.constant 1.000000e+00 : f32
    %191 = vector.broadcast %cst_34 : f32 to vector<2x32xf32>
    %192 = arith.addf %191, %190 : vector<2x32xf32>
    %193 = arith.divf %191, %192 : vector<2x32xf32>
    %194 = vector.extract_strided_slice %187 {offsets = [0, 32], sizes = [2, 32], strides = [1, 1]} : vector<2x128xf32> to vector<2x32xf32>
    %195 = arith.negf %194 : vector<2x32xf32>
    %196 = math.exp %195 : vector<2x32xf32>
    %cst_35 = arith.constant 1.000000e+00 : f32
    %197 = vector.broadcast %cst_35 : f32 to vector<2x32xf32>
    %198 = arith.addf %197, %196 : vector<2x32xf32>
    %199 = arith.divf %197, %198 : vector<2x32xf32>
    %200 = vector.extract_strided_slice %187 {offsets = [0, 64], sizes = [2, 32], strides = [1, 1]} : vector<2x128xf32> to vector<2x32xf32>
    %201 = math.tanh %200 : vector<2x32xf32>
    %202 = vector.extract_strided_slice %187 {offsets = [0, 96], sizes = [2, 32], strides = [1, 1]} : vector<2x128xf32> to vector<2x32xf32>
    %203 = arith.negf %202 : vector<2x32xf32>
    %204 = math.exp %203 : vector<2x32xf32>
    %cst_36 = arith.constant 1.000000e+00 : f32
    %205 = vector.broadcast %cst_36 : f32 to vector<2x32xf32>
    %206 = arith.addf %205, %204 : vector<2x32xf32>
    %207 = arith.divf %205, %206 : vector<2x32xf32>
    %208 = arith.mulf %199, %181 : vector<2x32xf32>
    %209 = arith.mulf %193, %201 : vector<2x32xf32>
    %210 = arith.addf %208, %209 : vector<2x32xf32>
    %211 = math.tanh %210 : vector<2x32xf32>
    %212 = arith.mulf %207, %211 : vector<2x32xf32>
    %213 = vector.extract_strided_slice %7 {offsets = [14, 0], sizes = [2, 128], strides = [1, 1]} : vector<16x128xf32> to vector<2x128xf32>
    %214 = arith.truncf %212 : vector<2x32xf32> to vector<2x32xbf16>
    %cst_37 = arith.constant dense<0.000000e+00> : vector<2x128xf32>
    %215 = tpu.matmul %214, %2, %cst_37 {dimension_numbers = #tpu.dot_dimension_numbers<[1], [0], [0], [1], [0, 0, 1, 1], [], []>} : vector<2x32xbf16>, vector<32x128xbf16>, vector<2x128xf32> -> vector<2x128xf32>
    %216 = arith.addf %213, %215 : vector<2x128xf32>
    %217 = vector.extract_strided_slice %216 {offsets = [0, 0], sizes = [2, 32], strides = [1, 1]} : vector<2x128xf32> to vector<2x32xf32>
    %218 = arith.negf %217 : vector<2x32xf32>
    %219 = math.exp %218 : vector<2x32xf32>
    %cst_38 = arith.constant 1.000000e+00 : f32
    %220 = vector.broadcast %cst_38 : f32 to vector<2x32xf32>
    %221 = arith.addf %220, %219 : vector<2x32xf32>
    %222 = arith.divf %220, %221 : vector<2x32xf32>
    %223 = vector.extract_strided_slice %216 {offsets = [0, 32], sizes = [2, 32], strides = [1, 1]} : vector<2x128xf32> to vector<2x32xf32>
    %224 = arith.negf %223 : vector<2x32xf32>
    %225 = math.exp %224 : vector<2x32xf32>
    %cst_39 = arith.constant 1.000000e+00 : f32
    %226 = vector.broadcast %cst_39 : f32 to vector<2x32xf32>
    %227 = arith.addf %226, %225 : vector<2x32xf32>
    %228 = arith.divf %226, %227 : vector<2x32xf32>
    %229 = vector.extract_strided_slice %216 {offsets = [0, 64], sizes = [2, 32], strides = [1, 1]} : vector<2x128xf32> to vector<2x32xf32>
    %230 = math.tanh %229 : vector<2x32xf32>
    %231 = vector.extract_strided_slice %216 {offsets = [0, 96], sizes = [2, 32], strides = [1, 1]} : vector<2x128xf32> to vector<2x32xf32>
    %232 = arith.negf %231 : vector<2x32xf32>
    %233 = math.exp %232 : vector<2x32xf32>
    %cst_40 = arith.constant 1.000000e+00 : f32
    %234 = vector.broadcast %cst_40 : f32 to vector<2x32xf32>
    %235 = arith.addf %234, %233 : vector<2x32xf32>
    %236 = arith.divf %234, %235 : vector<2x32xf32>
    %237 = arith.mulf %228, %210 : vector<2x32xf32>
    %238 = arith.mulf %222, %230 : vector<2x32xf32>
    %239 = arith.addf %237, %238 : vector<2x32xf32>
    %240 = math.tanh %239 : vector<2x32xf32>
    %241 = arith.mulf %236, %240 : vector<2x32xf32>
    %242 = tpu.concatenate %38, %67, %96, %125, %154, %183, %212, %241 in 0 : vector<2x32xf32>, vector<2x32xf32>, vector<2x32xf32>, vector<2x32xf32>, vector<2x32xf32>, vector<2x32xf32>, vector<2x32xf32>, vector<2x32xf32> -> vector<16x32xf32>
    %c0_41 = arith.constant 0 : index
    %c0_42 = arith.constant 0 : index
    %243 = vector.load %arg5[%c0_41, %c0_42] : memref<32x128xbf16, #tpu.memory_space<vmem>>, vector<32x128xbf16>
    %c0_43 = arith.constant 0 : index
    %c0_44 = arith.constant 0 : index
    %244 = vector.load %arg6[%c0_43, %c0_44] : memref<32x128xbf16, #tpu.memory_space<vmem>>, vector<32x128xbf16>
    %c0_45 = arith.constant 0 : index
    %c0_46 = arith.constant 0 : index
    %245 = vector.load %arg7[%c0_45, %c0_46] : memref<1x128xf32, #tpu.memory_space<vmem>>, vector<1x128xf32>
    %246 = arith.truncf %242 : vector<16x32xf32> to vector<16x32xbf16>
    %cst_47 = arith.constant dense<0.000000e+00> : vector<16x128xf32>
    %247 = tpu.matmul %246, %243, %cst_47 {dimension_numbers = #tpu.dot_dimension_numbers<[1], [0], [0], [1], [0, 0, 1, 1], [], []>} : vector<16x32xbf16>, vector<32x128xbf16>, vector<16x128xf32> -> vector<16x128xf32>
    %248 = vector.broadcast %245 : vector<1x128xf32> to vector<16x128xf32>
    %249 = arith.addf %247, %248 : vector<16x128xf32>
    %cst_48 = arith.constant 0.000000e+00 : f32
    %250 = vector.broadcast %cst_48 : f32 to vector<2x32xf32>
    %cst_49 = arith.constant 0.000000e+00 : f32
    %251 = vector.broadcast %cst_49 : f32 to vector<2x32xf32>
    %252 = vector.extract_strided_slice %249 {offsets = [0, 0], sizes = [2, 128], strides = [1, 1]} : vector<16x128xf32> to vector<2x128xf32>
    %253 = arith.truncf %250 : vector<2x32xf32> to vector<2x32xbf16>
    %cst_50 = arith.constant dense<0.000000e+00> : vector<2x128xf32>
    %254 = tpu.matmul %253, %244, %cst_50 {dimension_numbers = #tpu.dot_dimension_numbers<[1], [0], [0], [1], [0, 0, 1, 1], [], []>} : vector<2x32xbf16>, vector<32x128xbf16>, vector<2x128xf32> -> vector<2x128xf32>
    %255 = arith.addf %252, %254 : vector<2x128xf32>
    %256 = vector.extract_strided_slice %255 {offsets = [0, 0], sizes = [2, 32], strides = [1, 1]} : vector<2x128xf32> to vector<2x32xf32>
    %257 = arith.negf %256 : vector<2x32xf32>
    %258 = math.exp %257 : vector<2x32xf32>
    %cst_51 = arith.constant 1.000000e+00 : f32
    %259 = vector.broadcast %cst_51 : f32 to vector<2x32xf32>
    %260 = arith.addf %259, %258 : vector<2x32xf32>
    %261 = arith.divf %259, %260 : vector<2x32xf32>
    %262 = vector.extract_strided_slice %255 {offsets = [0, 32], sizes = [2, 32], strides = [1, 1]} : vector<2x128xf32> to vector<2x32xf32>
    %263 = arith.negf %262 : vector<2x32xf32>
    %264 = math.exp %263 : vector<2x32xf32>
    %cst_52 = arith.constant 1.000000e+00 : f32
    %265 = vector.broadcast %cst_52 : f32 to vector<2x32xf32>
    %266 = arith.addf %265, %264 : vector<2x32xf32>
    %267 = arith.divf %265, %266 : vector<2x32xf32>
    %268 = vector.extract_strided_slice %255 {offsets = [0, 64], sizes = [2, 32], strides = [1, 1]} : vector<2x128xf32> to vector<2x32xf32>
    %269 = math.tanh %268 : vector<2x32xf32>
    %270 = vector.extract_strided_slice %255 {offsets = [0, 96], sizes = [2, 32], strides = [1, 1]} : vector<2x128xf32> to vector<2x32xf32>
    %271 = arith.negf %270 : vector<2x32xf32>
    %272 = math.exp %271 : vector<2x32xf32>
    %cst_53 = arith.constant 1.000000e+00 : f32
    %273 = vector.broadcast %cst_53 : f32 to vector<2x32xf32>
    %274 = arith.addf %273, %272 : vector<2x32xf32>
    %275 = arith.divf %273, %274 : vector<2x32xf32>
    %276 = arith.mulf %267, %251 : vector<2x32xf32>
    %277 = arith.mulf %261, %269 : vector<2x32xf32>
    %278 = arith.addf %276, %277 : vector<2x32xf32>
    %279 = math.tanh %278 : vector<2x32xf32>
    %280 = arith.mulf %275, %279 : vector<2x32xf32>
    %281 = vector.extract_strided_slice %249 {offsets = [2, 0], sizes = [2, 128], strides = [1, 1]} : vector<16x128xf32> to vector<2x128xf32>
    %282 = arith.truncf %280 : vector<2x32xf32> to vector<2x32xbf16>
    %cst_54 = arith.constant dense<0.000000e+00> : vector<2x128xf32>
    %283 = tpu.matmul %282, %244, %cst_54 {dimension_numbers = #tpu.dot_dimension_numbers<[1], [0], [0], [1], [0, 0, 1, 1], [], []>} : vector<2x32xbf16>, vector<32x128xbf16>, vector<2x128xf32> -> vector<2x128xf32>
    %284 = arith.addf %281, %283 : vector<2x128xf32>
    %285 = vector.extract_strided_slice %284 {offsets = [0, 0], sizes = [2, 32], strides = [1, 1]} : vector<2x128xf32> to vector<2x32xf32>
    %286 = arith.negf %285 : vector<2x32xf32>
    %287 = math.exp %286 : vector<2x32xf32>
    %cst_55 = arith.constant 1.000000e+00 : f32
    %288 = vector.broadcast %cst_55 : f32 to vector<2x32xf32>
    %289 = arith.addf %288, %287 : vector<2x32xf32>
    %290 = arith.divf %288, %289 : vector<2x32xf32>
    %291 = vector.extract_strided_slice %284 {offsets = [0, 32], sizes = [2, 32], strides = [1, 1]} : vector<2x128xf32> to vector<2x32xf32>
    %292 = arith.negf %291 : vector<2x32xf32>
    %293 = math.exp %292 : vector<2x32xf32>
    %cst_56 = arith.constant 1.000000e+00 : f32
    %294 = vector.broadcast %cst_56 : f32 to vector<2x32xf32>
    %295 = arith.addf %294, %293 : vector<2x32xf32>
    %296 = arith.divf %294, %295 : vector<2x32xf32>
    %297 = vector.extract_strided_slice %284 {offsets = [0, 64], sizes = [2, 32], strides = [1, 1]} : vector<2x128xf32> to vector<2x32xf32>
    %298 = math.tanh %297 : vector<2x32xf32>
    %299 = vector.extract_strided_slice %284 {offsets = [0, 96], sizes = [2, 32], strides = [1, 1]} : vector<2x128xf32> to vector<2x32xf32>
    %300 = arith.negf %299 : vector<2x32xf32>
    %301 = math.exp %300 : vector<2x32xf32>
    %cst_57 = arith.constant 1.000000e+00 : f32
    %302 = vector.broadcast %cst_57 : f32 to vector<2x32xf32>
    %303 = arith.addf %302, %301 : vector<2x32xf32>
    %304 = arith.divf %302, %303 : vector<2x32xf32>
    %305 = arith.mulf %296, %278 : vector<2x32xf32>
    %306 = arith.mulf %290, %298 : vector<2x32xf32>
    %307 = arith.addf %305, %306 : vector<2x32xf32>
    %308 = math.tanh %307 : vector<2x32xf32>
    %309 = arith.mulf %304, %308 : vector<2x32xf32>
    %310 = vector.extract_strided_slice %249 {offsets = [4, 0], sizes = [2, 128], strides = [1, 1]} : vector<16x128xf32> to vector<2x128xf32>
    %311 = arith.truncf %309 : vector<2x32xf32> to vector<2x32xbf16>
    %cst_58 = arith.constant dense<0.000000e+00> : vector<2x128xf32>
    %312 = tpu.matmul %311, %244, %cst_58 {dimension_numbers = #tpu.dot_dimension_numbers<[1], [0], [0], [1], [0, 0, 1, 1], [], []>} : vector<2x32xbf16>, vector<32x128xbf16>, vector<2x128xf32> -> vector<2x128xf32>
    %313 = arith.addf %310, %312 : vector<2x128xf32>
    %314 = vector.extract_strided_slice %313 {offsets = [0, 0], sizes = [2, 32], strides = [1, 1]} : vector<2x128xf32> to vector<2x32xf32>
    %315 = arith.negf %314 : vector<2x32xf32>
    %316 = math.exp %315 : vector<2x32xf32>
    %cst_59 = arith.constant 1.000000e+00 : f32
    %317 = vector.broadcast %cst_59 : f32 to vector<2x32xf32>
    %318 = arith.addf %317, %316 : vector<2x32xf32>
    %319 = arith.divf %317, %318 : vector<2x32xf32>
    %320 = vector.extract_strided_slice %313 {offsets = [0, 32], sizes = [2, 32], strides = [1, 1]} : vector<2x128xf32> to vector<2x32xf32>
    %321 = arith.negf %320 : vector<2x32xf32>
    %322 = math.exp %321 : vector<2x32xf32>
    %cst_60 = arith.constant 1.000000e+00 : f32
    %323 = vector.broadcast %cst_60 : f32 to vector<2x32xf32>
    %324 = arith.addf %323, %322 : vector<2x32xf32>
    %325 = arith.divf %323, %324 : vector<2x32xf32>
    %326 = vector.extract_strided_slice %313 {offsets = [0, 64], sizes = [2, 32], strides = [1, 1]} : vector<2x128xf32> to vector<2x32xf32>
    %327 = math.tanh %326 : vector<2x32xf32>
    %328 = vector.extract_strided_slice %313 {offsets = [0, 96], sizes = [2, 32], strides = [1, 1]} : vector<2x128xf32> to vector<2x32xf32>
    %329 = arith.negf %328 : vector<2x32xf32>
    %330 = math.exp %329 : vector<2x32xf32>
    %cst_61 = arith.constant 1.000000e+00 : f32
    %331 = vector.broadcast %cst_61 : f32 to vector<2x32xf32>
    %332 = arith.addf %331, %330 : vector<2x32xf32>
    %333 = arith.divf %331, %332 : vector<2x32xf32>
    %334 = arith.mulf %325, %307 : vector<2x32xf32>
    %335 = arith.mulf %319, %327 : vector<2x32xf32>
    %336 = arith.addf %334, %335 : vector<2x32xf32>
    %337 = math.tanh %336 : vector<2x32xf32>
    %338 = arith.mulf %333, %337 : vector<2x32xf32>
    %339 = vector.extract_strided_slice %249 {offsets = [6, 0], sizes = [2, 128], strides = [1, 1]} : vector<16x128xf32> to vector<2x128xf32>
    %340 = arith.truncf %338 : vector<2x32xf32> to vector<2x32xbf16>
    %cst_62 = arith.constant dense<0.000000e+00> : vector<2x128xf32>
    %341 = tpu.matmul %340, %244, %cst_62 {dimension_numbers = #tpu.dot_dimension_numbers<[1], [0], [0], [1], [0, 0, 1, 1], [], []>} : vector<2x32xbf16>, vector<32x128xbf16>, vector<2x128xf32> -> vector<2x128xf32>
    %342 = arith.addf %339, %341 : vector<2x128xf32>
    %343 = vector.extract_strided_slice %342 {offsets = [0, 0], sizes = [2, 32], strides = [1, 1]} : vector<2x128xf32> to vector<2x32xf32>
    %344 = arith.negf %343 : vector<2x32xf32>
    %345 = math.exp %344 : vector<2x32xf32>
    %cst_63 = arith.constant 1.000000e+00 : f32
    %346 = vector.broadcast %cst_63 : f32 to vector<2x32xf32>
    %347 = arith.addf %346, %345 : vector<2x32xf32>
    %348 = arith.divf %346, %347 : vector<2x32xf32>
    %349 = vector.extract_strided_slice %342 {offsets = [0, 32], sizes = [2, 32], strides = [1, 1]} : vector<2x128xf32> to vector<2x32xf32>
    %350 = arith.negf %349 : vector<2x32xf32>
    %351 = math.exp %350 : vector<2x32xf32>
    %cst_64 = arith.constant 1.000000e+00 : f32
    %352 = vector.broadcast %cst_64 : f32 to vector<2x32xf32>
    %353 = arith.addf %352, %351 : vector<2x32xf32>
    %354 = arith.divf %352, %353 : vector<2x32xf32>
    %355 = vector.extract_strided_slice %342 {offsets = [0, 64], sizes = [2, 32], strides = [1, 1]} : vector<2x128xf32> to vector<2x32xf32>
    %356 = math.tanh %355 : vector<2x32xf32>
    %357 = vector.extract_strided_slice %342 {offsets = [0, 96], sizes = [2, 32], strides = [1, 1]} : vector<2x128xf32> to vector<2x32xf32>
    %358 = arith.negf %357 : vector<2x32xf32>
    %359 = math.exp %358 : vector<2x32xf32>
    %cst_65 = arith.constant 1.000000e+00 : f32
    %360 = vector.broadcast %cst_65 : f32 to vector<2x32xf32>
    %361 = arith.addf %360, %359 : vector<2x32xf32>
    %362 = arith.divf %360, %361 : vector<2x32xf32>
    %363 = arith.mulf %354, %336 : vector<2x32xf32>
    %364 = arith.mulf %348, %356 : vector<2x32xf32>
    %365 = arith.addf %363, %364 : vector<2x32xf32>
    %366 = math.tanh %365 : vector<2x32xf32>
    %367 = arith.mulf %362, %366 : vector<2x32xf32>
    %368 = vector.extract_strided_slice %249 {offsets = [8, 0], sizes = [2, 128], strides = [1, 1]} : vector<16x128xf32> to vector<2x128xf32>
    %369 = arith.truncf %367 : vector<2x32xf32> to vector<2x32xbf16>
    %cst_66 = arith.constant dense<0.000000e+00> : vector<2x128xf32>
    %370 = tpu.matmul %369, %244, %cst_66 {dimension_numbers = #tpu.dot_dimension_numbers<[1], [0], [0], [1], [0, 0, 1, 1], [], []>} : vector<2x32xbf16>, vector<32x128xbf16>, vector<2x128xf32> -> vector<2x128xf32>
    %371 = arith.addf %368, %370 : vector<2x128xf32>
    %372 = vector.extract_strided_slice %371 {offsets = [0, 0], sizes = [2, 32], strides = [1, 1]} : vector<2x128xf32> to vector<2x32xf32>
    %373 = arith.negf %372 : vector<2x32xf32>
    %374 = math.exp %373 : vector<2x32xf32>
    %cst_67 = arith.constant 1.000000e+00 : f32
    %375 = vector.broadcast %cst_67 : f32 to vector<2x32xf32>
    %376 = arith.addf %375, %374 : vector<2x32xf32>
    %377 = arith.divf %375, %376 : vector<2x32xf32>
    %378 = vector.extract_strided_slice %371 {offsets = [0, 32], sizes = [2, 32], strides = [1, 1]} : vector<2x128xf32> to vector<2x32xf32>
    %379 = arith.negf %378 : vector<2x32xf32>
    %380 = math.exp %379 : vector<2x32xf32>
    %cst_68 = arith.constant 1.000000e+00 : f32
    %381 = vector.broadcast %cst_68 : f32 to vector<2x32xf32>
    %382 = arith.addf %381, %380 : vector<2x32xf32>
    %383 = arith.divf %381, %382 : vector<2x32xf32>
    %384 = vector.extract_strided_slice %371 {offsets = [0, 64], sizes = [2, 32], strides = [1, 1]} : vector<2x128xf32> to vector<2x32xf32>
    %385 = math.tanh %384 : vector<2x32xf32>
    %386 = vector.extract_strided_slice %371 {offsets = [0, 96], sizes = [2, 32], strides = [1, 1]} : vector<2x128xf32> to vector<2x32xf32>
    %387 = arith.negf %386 : vector<2x32xf32>
    %388 = math.exp %387 : vector<2x32xf32>
    %cst_69 = arith.constant 1.000000e+00 : f32
    %389 = vector.broadcast %cst_69 : f32 to vector<2x32xf32>
    %390 = arith.addf %389, %388 : vector<2x32xf32>
    %391 = arith.divf %389, %390 : vector<2x32xf32>
    %392 = arith.mulf %383, %365 : vector<2x32xf32>
    %393 = arith.mulf %377, %385 : vector<2x32xf32>
    %394 = arith.addf %392, %393 : vector<2x32xf32>
    %395 = math.tanh %394 : vector<2x32xf32>
    %396 = arith.mulf %391, %395 : vector<2x32xf32>
    %397 = vector.extract_strided_slice %249 {offsets = [10, 0], sizes = [2, 128], strides = [1, 1]} : vector<16x128xf32> to vector<2x128xf32>
    %398 = arith.truncf %396 : vector<2x32xf32> to vector<2x32xbf16>
    %cst_70 = arith.constant dense<0.000000e+00> : vector<2x128xf32>
    %399 = tpu.matmul %398, %244, %cst_70 {dimension_numbers = #tpu.dot_dimension_numbers<[1], [0], [0], [1], [0, 0, 1, 1], [], []>} : vector<2x32xbf16>, vector<32x128xbf16>, vector<2x128xf32> -> vector<2x128xf32>
    %400 = arith.addf %397, %399 : vector<2x128xf32>
    %401 = vector.extract_strided_slice %400 {offsets = [0, 0], sizes = [2, 32], strides = [1, 1]} : vector<2x128xf32> to vector<2x32xf32>
    %402 = arith.negf %401 : vector<2x32xf32>
    %403 = math.exp %402 : vector<2x32xf32>
    %cst_71 = arith.constant 1.000000e+00 : f32
    %404 = vector.broadcast %cst_71 : f32 to vector<2x32xf32>
    %405 = arith.addf %404, %403 : vector<2x32xf32>
    %406 = arith.divf %404, %405 : vector<2x32xf32>
    %407 = vector.extract_strided_slice %400 {offsets = [0, 32], sizes = [2, 32], strides = [1, 1]} : vector<2x128xf32> to vector<2x32xf32>
    %408 = arith.negf %407 : vector<2x32xf32>
    %409 = math.exp %408 : vector<2x32xf32>
    %cst_72 = arith.constant 1.000000e+00 : f32
    %410 = vector.broadcast %cst_72 : f32 to vector<2x32xf32>
    %411 = arith.addf %410, %409 : vector<2x32xf32>
    %412 = arith.divf %410, %411 : vector<2x32xf32>
    %413 = vector.extract_strided_slice %400 {offsets = [0, 64], sizes = [2, 32], strides = [1, 1]} : vector<2x128xf32> to vector<2x32xf32>
    %414 = math.tanh %413 : vector<2x32xf32>
    %415 = vector.extract_strided_slice %400 {offsets = [0, 96], sizes = [2, 32], strides = [1, 1]} : vector<2x128xf32> to vector<2x32xf32>
    %416 = arith.negf %415 : vector<2x32xf32>
    %417 = math.exp %416 : vector<2x32xf32>
    %cst_73 = arith.constant 1.000000e+00 : f32
    %418 = vector.broadcast %cst_73 : f32 to vector<2x32xf32>
    %419 = arith.addf %418, %417 : vector<2x32xf32>
    %420 = arith.divf %418, %419 : vector<2x32xf32>
    %421 = arith.mulf %412, %394 : vector<2x32xf32>
    %422 = arith.mulf %406, %414 : vector<2x32xf32>
    %423 = arith.addf %421, %422 : vector<2x32xf32>
    %424 = math.tanh %423 : vector<2x32xf32>
    %425 = arith.mulf %420, %424 : vector<2x32xf32>
    %426 = vector.extract_strided_slice %249 {offsets = [12, 0], sizes = [2, 128], strides = [1, 1]} : vector<16x128xf32> to vector<2x128xf32>
    %427 = arith.truncf %425 : vector<2x32xf32> to vector<2x32xbf16>
    %cst_74 = arith.constant dense<0.000000e+00> : vector<2x128xf32>
    %428 = tpu.matmul %427, %244, %cst_74 {dimension_numbers = #tpu.dot_dimension_numbers<[1], [0], [0], [1], [0, 0, 1, 1], [], []>} : vector<2x32xbf16>, vector<32x128xbf16>, vector<2x128xf32> -> vector<2x128xf32>
    %429 = arith.addf %426, %428 : vector<2x128xf32>
    %430 = vector.extract_strided_slice %429 {offsets = [0, 0], sizes = [2, 32], strides = [1, 1]} : vector<2x128xf32> to vector<2x32xf32>
    %431 = arith.negf %430 : vector<2x32xf32>
    %432 = math.exp %431 : vector<2x32xf32>
    %cst_75 = arith.constant 1.000000e+00 : f32
    %433 = vector.broadcast %cst_75 : f32 to vector<2x32xf32>
    %434 = arith.addf %433, %432 : vector<2x32xf32>
    %435 = arith.divf %433, %434 : vector<2x32xf32>
    %436 = vector.extract_strided_slice %429 {offsets = [0, 32], sizes = [2, 32], strides = [1, 1]} : vector<2x128xf32> to vector<2x32xf32>
    %437 = arith.negf %436 : vector<2x32xf32>
    %438 = math.exp %437 : vector<2x32xf32>
    %cst_76 = arith.constant 1.000000e+00 : f32
    %439 = vector.broadcast %cst_76 : f32 to vector<2x32xf32>
    %440 = arith.addf %439, %438 : vector<2x32xf32>
    %441 = arith.divf %439, %440 : vector<2x32xf32>
    %442 = vector.extract_strided_slice %429 {offsets = [0, 64], sizes = [2, 32], strides = [1, 1]} : vector<2x128xf32> to vector<2x32xf32>
    %443 = math.tanh %442 : vector<2x32xf32>
    %444 = vector.extract_strided_slice %429 {offsets = [0, 96], sizes = [2, 32], strides = [1, 1]} : vector<2x128xf32> to vector<2x32xf32>
    %445 = arith.negf %444 : vector<2x32xf32>
    %446 = math.exp %445 : vector<2x32xf32>
    %cst_77 = arith.constant 1.000000e+00 : f32
    %447 = vector.broadcast %cst_77 : f32 to vector<2x32xf32>
    %448 = arith.addf %447, %446 : vector<2x32xf32>
    %449 = arith.divf %447, %448 : vector<2x32xf32>
    %450 = arith.mulf %441, %423 : vector<2x32xf32>
    %451 = arith.mulf %435, %443 : vector<2x32xf32>
    %452 = arith.addf %450, %451 : vector<2x32xf32>
    %453 = math.tanh %452 : vector<2x32xf32>
    %454 = arith.mulf %449, %453 : vector<2x32xf32>
    %455 = vector.extract_strided_slice %249 {offsets = [14, 0], sizes = [2, 128], strides = [1, 1]} : vector<16x128xf32> to vector<2x128xf32>
    %456 = arith.truncf %454 : vector<2x32xf32> to vector<2x32xbf16>
    %cst_78 = arith.constant dense<0.000000e+00> : vector<2x128xf32>
    %457 = tpu.matmul %456, %244, %cst_78 {dimension_numbers = #tpu.dot_dimension_numbers<[1], [0], [0], [1], [0, 0, 1, 1], [], []>} : vector<2x32xbf16>, vector<32x128xbf16>, vector<2x128xf32> -> vector<2x128xf32>
    %458 = arith.addf %455, %457 : vector<2x128xf32>
    %459 = vector.extract_strided_slice %458 {offsets = [0, 0], sizes = [2, 32], strides = [1, 1]} : vector<2x128xf32> to vector<2x32xf32>
    %460 = arith.negf %459 : vector<2x32xf32>
    %461 = math.exp %460 : vector<2x32xf32>
    %cst_79 = arith.constant 1.000000e+00 : f32
    %462 = vector.broadcast %cst_79 : f32 to vector<2x32xf32>
    %463 = arith.addf %462, %461 : vector<2x32xf32>
    %464 = arith.divf %462, %463 : vector<2x32xf32>
    %465 = vector.extract_strided_slice %458 {offsets = [0, 32], sizes = [2, 32], strides = [1, 1]} : vector<2x128xf32> to vector<2x32xf32>
    %466 = arith.negf %465 : vector<2x32xf32>
    %467 = math.exp %466 : vector<2x32xf32>
    %cst_80 = arith.constant 1.000000e+00 : f32
    %468 = vector.broadcast %cst_80 : f32 to vector<2x32xf32>
    %469 = arith.addf %468, %467 : vector<2x32xf32>
    %470 = arith.divf %468, %469 : vector<2x32xf32>
    %471 = vector.extract_strided_slice %458 {offsets = [0, 64], sizes = [2, 32], strides = [1, 1]} : vector<2x128xf32> to vector<2x32xf32>
    %472 = math.tanh %471 : vector<2x32xf32>
    %473 = vector.extract_strided_slice %458 {offsets = [0, 96], sizes = [2, 32], strides = [1, 1]} : vector<2x128xf32> to vector<2x32xf32>
    %474 = arith.negf %473 : vector<2x32xf32>
    %475 = math.exp %474 : vector<2x32xf32>
    %cst_81 = arith.constant 1.000000e+00 : f32
    %476 = vector.broadcast %cst_81 : f32 to vector<2x32xf32>
    %477 = arith.addf %476, %475 : vector<2x32xf32>
    %478 = arith.divf %476, %477 : vector<2x32xf32>
    %479 = arith.mulf %470, %452 : vector<2x32xf32>
    %480 = arith.mulf %464, %472 : vector<2x32xf32>
    %481 = arith.addf %479, %480 : vector<2x32xf32>
    %482 = math.tanh %481 : vector<2x32xf32>
    %483 = arith.mulf %478, %482 : vector<2x32xf32>
    %484 = tpu.concatenate %280, %309, %338, %367, %396, %425, %454, %483 in 0 : vector<2x32xf32>, vector<2x32xf32>, vector<2x32xf32>, vector<2x32xf32>, vector<2x32xf32>, vector<2x32xf32>, vector<2x32xf32>, vector<2x32xf32> -> vector<16x32xf32>
    %c0_82 = arith.constant 0 : index
    %c0_83 = arith.constant 0 : index
    %485 = vector.load %arg1[%c0_82, %c0_83] : memref<16x1xf32, #tpu.memory_space<vmem>>, vector<16x1xf32>
    %486 = vector.broadcast %485 : vector<16x1xf32> to vector<16x32xf32>
    %487 = arith.mulf %484, %486 : vector<16x32xf32>
    %c0_84 = arith.constant 0 : index
    %c0_85 = arith.constant 0 : index
    %488 = vector.load %arg8[%c0_84, %c0_85] : memref<32x128xbf16, #tpu.memory_space<vmem>>, vector<32x128xbf16>
    %c0_86 = arith.constant 0 : index
    %c0_87 = arith.constant 0 : index
    %489 = vector.load %arg9[%c0_86, %c0_87] : memref<1x128xf32, #tpu.memory_space<vmem>>, vector<1x128xf32>
    %c0_88 = arith.constant 0 : index
    %c0_89 = arith.constant 0 : index
    %490 = vector.load %arg10[%c0_88, %c0_89] : memref<128x128xbf16, #tpu.memory_space<vmem>>, vector<128x128xbf16>
    %c0_90 = arith.constant 0 : index
    %c0_91 = arith.constant 0 : index
    %491 = vector.load %arg11[%c0_90, %c0_91] : memref<1x128xf32, #tpu.memory_space<vmem>>, vector<1x128xf32>
    %492 = arith.truncf %487 : vector<16x32xf32> to vector<16x32xbf16>
    %cst_92 = arith.constant dense<0.000000e+00> : vector<16x128xf32>
    %493 = tpu.matmul %492, %488, %cst_92 {dimension_numbers = #tpu.dot_dimension_numbers<[1], [0], [0], [1], [0, 0, 1, 1], [], []>} : vector<16x32xbf16>, vector<32x128xbf16>, vector<16x128xf32> -> vector<16x128xf32>
    %494 = vector.broadcast %489 : vector<1x128xf32> to vector<16x128xf32>
    %495 = arith.addf %493, %494 : vector<16x128xf32>
    %cst_93 = arith.constant 0.000000e+00 : f32
    %496 = vector.broadcast %cst_93 : f32 to vector<16x128xf32>
    %497 = arith.cmpf oge, %495, %496 : vector<16x128xf32>
    %cst_94 = arith.constant 0.00999999977 : f32
    %498 = vector.broadcast %cst_94 : f32 to vector<16x128xf32>
    %499 = arith.mulf %498, %495 : vector<16x128xf32>
    %500 = arith.select %497, %495, %499 : vector<16x128xi1>, vector<16x128xf32>
    %501 = arith.truncf %500 : vector<16x128xf32> to vector<16x128xbf16>
    %cst_95 = arith.constant dense<0.000000e+00> : vector<16x128xf32>
    %502 = tpu.matmul %501, %490, %cst_95 {dimension_numbers = #tpu.dot_dimension_numbers<[1], [0], [0], [1], [0, 0, 1, 1], [], []>} : vector<16x128xbf16>, vector<128x128xbf16>, vector<16x128xf32> -> vector<16x128xf32>
    %503 = vector.broadcast %491 : vector<1x128xf32> to vector<16x128xf32>
    %504 = arith.addf %502, %503 : vector<16x128xf32>
    %c0_96 = arith.constant 0 : index
    %c0_97 = arith.constant 0 : index
    %505 = vector.load %arg12[%c0_96, %c0_97] : memref<16x128xf32, #tpu.memory_space<vmem>>, vector<16x128xf32>
    tpu.vector_store %arg12[%c0_96, %c0_97], %504 {strides = array<i32>} : memref<16x128xf32, #tpu.memory_space<vmem>>, vector<16x128xf32>,
    return
  }
}

</mosaic_0001>

<bundles_post_ra>
// kernel: _lambda_.1
= control target key start
LH: loop header
LB: loop body
LE: loop exit
PB: predicated region body
PF: predicated region fallthrough
CT: control target
= control target key end

     0   :  { %17 = vsyncpa [#allocation3], 0  ;;  %s2683_s0 = inlined_call_operand.vmem [shape: f32[16,16], index: 0, kind: input, shape index: {}]   ;;  %s2684_s1 = inlined_call_operand.vmem [shape: f32[16,1], index: 1, kind: input, shape index: {}]   ;;  %s2685_s2 = inlined_call_operand.hbm [shape: bf16[16,128], index: 2, kind: input, shape index: {}]   ;;  %s2686_s3 = inlined_call_operand.hbm [shape: bf16[32,128], index: 3, kind: input, shape index: {}]   ;;  %s2687_s4 = inlined_call_operand.vmem [shape: f32[1,128], index: 4, kind: input, shape index: {}]   ;;  %s2688_s5 = inlined_call_operand.hbm [shape: bf16[32,128], index: 5, kind: input, shape index: {}]   ;;  %s2689_s6 = inlined_call_operand.hbm [shape: bf16[32,128], index: 6, kind: input, shape index: {}]   ;;  %s2690_s7 = inlined_call_operand.vmem [shape: f32[1,128], index: 7, kind: input, shape index: {}]   ;;  %s2691_s8 = inlined_call_operand.vmem [shape: bf16[32,128], index: 8, kind: input, shape index: {}]   ;;  %s2692_s9 = inlined_call_operand.vmem [shape: f32[1,128], index: 9, kind: input, shape index: {}]   ;;  %s2693_s10 = inlined_call_operand.vmem [shape: bf16[128,128], index: 10, kind: input, shape index: {}]   ;;  %s2694_s11 = inlined_call_operand.vmem [shape: f32[1,128], index: 11, kind: input, shape index: {}]   ;;  %s2695_s12 = inlined_call_operand.vmem [shape: f32[16,128], index: 12, kind: output, shape index: {}]  }
   0x1   :  { %18 = vsyncpa [#allocation5], 0 }
   0x2   :  { %19 = vsyncpa [#allocation8], 0  ;;  %s2253_s21 = smov [#allocation4]   ;;  %s2254_s23 = smov [#allocation2]  }
   0x3   :  { %s41_s22 = sshll.u32 %s2253_s21, 4  ;;  %s29_s24 = sshll.u32 %s2254_s23, 4  ;;  %s42_s22 = int_to_ptr.vmem [resolvable:$true] %s41_s22  ;;  %s30_s24 = int_to_ptr.vmem [resolvable:$true] %s29_s24 }
   0x4   :  { %s2175_s25 = scalar_lea.vmem %s42_s22, 256  ;;  %p2180_p1 = scmp.lt.s32.totalorder %s42_s22, %s42_s22 }
   0x5   :  { %p2176_p0 = scmp.ne.s32.totalorder %s42_s22, %s2175_s25  ;;  %p2181_p2 = scmp.lt.s32.totalorder %s2175_s25, %s2175_s25 }
   0x7   :  { %p2182_p3 = por %p2181_p2, %p2180_p1 }
   0x9   :  { %p2183_p4 = pnand %p2182_p3, %p2176_p0 }
   0xb   :  { %2186 = shalt.err (!%p2183_p4)
}
   0xc   :  { %s2255_s26 = smov 64   ;;  %s2256_s27 = smov 4  }
   0xd   :  { %47 = dma.hbm_to_vmem [thread:$0]  %s2686_s3, 256, %s42_s22, [#allocation5], %s2255_s26, %s2255_s26, %s2256_s27  }
   0xe   :  { %s2195_s30 = scalar_lea.vmem %s30_s24, 128  ;;  %p2200_p6 = scmp.lt.s32.totalorder %s30_s24, %s30_s24 }
   0xf   :  { %p2196_p5 = scmp.ne.s32.totalorder %s30_s24, %s2195_s30  ;;  %p2201_p7 = scmp.lt.s32.totalorder %s2195_s30, %s2195_s30 }
  0x11   :  { %p2202_p8 = por %p2201_p7, %p2200_p6 }
  0x13   :  { %p2203_p9 = pnand %p2202_p8, %p2196_p5 }
  0x15   :  { %2206 = shalt.err (!%p2203_p9)
}
  0x16   :  { %35 = dma.hbm_to_vmem [thread:$0]  %s2685_s2, 128, %s30_s24, [#allocation3], %s2255_s26, %s2255_s26, %s2256_s27  }
  0x17   :  { %s2257_s15 = smov [#allocation6]   ;;  %s2258_s17 = smov [#allocation7]  }
  0x18   :  { %s55_s16 = sshll.u32 %s2257_s15, 4  ;;  %s67_s18 = sshll.u32 %s2258_s17, 4  ;;  %s56_s16 = int_to_ptr.vmem [resolvable:$true] %s55_s16  ;;  %s68_s18 = int_to_ptr.vmem [resolvable:$true] %s67_s18 }
  0x19   :  { %s2215_s3 = scalar_lea.vmem %s56_s16, 256  ;;  %p2220_p11 = scmp.lt.s32.totalorder %s56_s16, %s56_s16 }
  0x1a   :  { %p2216_p10 = scmp.ne.s32.totalorder %s56_s16, %s2215_s3  ;;  %p2221_p12 = scmp.lt.s32.totalorder %s2215_s3, %s2215_s3 }
  0x1c   :  { %p2222_p13 = por %p2221_p12, %p2220_p11 }
  0x1e   :  { %p2223_p0 = pnand %p2222_p13, %p2216_p10 }
  0x20   :  { %2226 = shalt.err (!%p2223_p0)
}
  0x21   :  { %61 = dma.hbm_to_vmem [thread:$0]  %s2688_s5, 256, %s56_s16, [#allocation5], %s2255_s26, %s2255_s26, %s2256_s27  }
  0x22   :  { %s2235_s2 = scalar_lea.vmem %s68_s18, 256  ;;  %p2240_p2 = scmp.lt.s32.totalorder %s68_s18, %s68_s18 }
  0x23   :  { %p2236_p1 = scmp.ne.s32.totalorder %s68_s18, %s2235_s2  ;;  %p2241_p3 = scmp.lt.s32.totalorder %s2235_s2, %s2235_s2 }
  0x25   :  { %p2242_p4 = por %p2241_p3, %p2240_p2 }
  0x27   :  { %p2243_p5 = pnand %p2242_p4, %p2236_p1 }
  0x29   :  { %2246 = shalt.err (!%p2243_p5)
}
  0x2a   :  { %73 = dma.hbm_to_vmem [thread:$0]  %s2689_s6, 256, %s68_s18, [#allocation8], %s2255_s26, %s2255_s26, %s2256_s27  }
  0x2b   :  { %2247 = dma.done.wait [#allocation3], 128  }
  0x2c   :  { %2248 = vsyncadd [#allocation3], 4294967168 }
  0x2d   :  { %2249 = dma.done.wait [#allocation5], 512  }
  0x2e   :  { %2250 = vsyncadd [#allocation5], 4294966784 }
  0x2f   :  { %2251 = dma.done.wait [#allocation8], 256  }
  0x30   :  { %2252 = vsyncadd [#allocation8], 4294967040  ;;  %v2259_v0 = vmov 0.0   ;;  %vm2260_vm0 = vmmov 0   ;;  %v2261_v1 = vmov 0   ;;  %v2022_v2 = vld [vmem:[#allocation2] sm:$0xff]  }
  0x31   :  { %1840 = vmatprep.subr.bf16.mxu0 %v2259_v0  ;;  %1842 = vmatprep.mubr.msk.bf16.mxu0 %vm2260_vm0, %v2259_v0  ;;  %v97_v3 = vld [vmem:[%s2683_s0] sm:$0xff]  ;;  %v98_v4 = vld [vmem:[%s2683_s0 + $0x8] sm:$0xff]  ;;  %vm119_vm1 = vcmask 130048   ;;  %v2366_v6 = vld [vmem:[#allocation4 + $0x8] sm:$0xff]   ;;  %vm176_vm2 = vcmask 261120   ;;  %vm793_vm3 = vcmask 1041408  }
  0x32   :  { %1878 = vmatprep.subr.bf16.mxu1 %v2259_v0  ;;  %1882 = vmatprep.mubr.msk.bf16.mxu1 %vm2260_vm0, %v2259_v0  ;;  %v106_v5 = vpack.c.bf16 %v98_v4, %v97_v3  ;;  %v2369_v7 = vld [vmem:[#allocation4] sm:$0xff]   ;;  %v1721_v10 = vld [vmem:[%s2687_s4] ss:$0 sm:$0xff]  ;;  %s2262_s4 = smov 32   ;;  %vm795_vm4 = vcmask 1043456   ;;  %vm797_vm5 = vcmask 1045504  }
  0x33   :  { %2020 = vset.pattern.permute.xlu0 %v2261_v1  ;;  %2021 = vset.pattern.permute.xlu1 %v2261_v1 }
  0x34   :  { %1841 = vmatpush3.bf16.msra.mxu0 %v2022_v2  ;;  %1879 = vmatpush3.bf16.msra.mxu1 %v2366_v6 }
  0x35   :  { %1846 = vmatprep.subr.bf16.mxu0 %v2259_v0  ;;  %1880 = vmatprep.subr.bf16.mxu1 %v2259_v0 }
  0x37   :  { %1843 = vmatmul.mubr.msk.bf16.vlgmr.msra.gmra.mxu0 %vm119_vm1, %v106_v5 }
  0x38   :  { %1847 = vmatpush3.bf16.msra.mxu0 %v2366_v6  ;;  %1850 = vmatprep.mubr.msk.bf16.mxu0 %vm2260_vm0, %v2259_v0 }
  0x39   :  { %1848 = vmatprep.subr.bf16.mxu0 %v2259_v0  ;;  %1881 = vmatpush3.bf16.msra.mxu1 %v2369_v7 }
  0x3a   :  { %1894 = vmatprep.subr.bf16.mxu1 %v2259_v0 }
  0x3c   :  { %1849 = vmatpush3.bf16.msra.mxu0 %v2369_v7 }
  0x3d   :  { %1854 = vmatprep.subr.bf16.mxu0 %v2259_v0 }
  0x3f   :  { %1851 = vmatmul.mubr.bf16.vlgmr.msra.gmra.mxu0 %v2261_v1 }
  0x40   :  { %1855 = vmatpush3.bf16.msra.mxu0 %v2366_v6  ;;  %1858 = vmatprep.mubr.msk.bf16.mxu0 %vm2260_vm0, %v2259_v0 }
  0x41   :  { %1856 = vmatprep.subr.bf16.mxu0 %v2259_v0 }
  0x44   :  { %1857 = vmatpush3.bf16.msra.mxu0 %v2369_v7 }
  0x45   :  { %1862 = vmatprep.subr.bf16.mxu0 %v2259_v0 }
  0xf7   :  { %v157_v8 = vpop.f32.mrf.mxu0 }
  0xf8   :  { %v2393_v14 = vadd.f32 %v1721_v10, %v157_v8 }
  0xf9   :  { %v1844_v9 = vpop.f32.mrf.mxu0 }
  0xfb   :  { %v160_v11 = vpop.f32.mrf.mxu0 }
  0xfc   :  { %v2391_v12 = vadd.f32 %v1721_v10, %v160_v11 }
  0xfd   :  { %v1845_v13 = vpop.f32.mrf.mxu0 }
  0xff   :  { %v214_v15 = vpop.f32.mrf.mxu0 }
 0x100   :  { %v220_v16 = vadd.f32 %v214_v15, %v2393_v14 }
 0x101   :  { %v1852_v17 = vpop.f32.mrf.mxu0 }
 0x102   :  { %2039 = vtanh.f32 %v220_v16  ;;  %v1726_v21 = vmul.f32 -1.442695, %v220_v16 }
 0x103   :  { %v217_v18 = vpop.f32.mrf.mxu0 }
 0x104   :  { %2041 = vpow2.f32 %v1726_v21 }
 0x105   :  { %v1853_v19 = vpop.f32.mrf.mxu0 }
 0x10f   :  { %v2040_v20 = vpop.eup %2039 }
 0x110   :  { %230 = vrot.lane.b32.xlu0 %v2040_v20, %s2255_s26 }
 0x111   :  { %v2042_v22 = vpop.eup %2041 }
 0x112   :  { %v224_v23 = vadd.f32 1.0, %v2042_v22 }
 0x114   :  { %2043 = vrcp.f32 %v224_v23 }
 0x121   :  { %v2044_v24 = vpop.eup %2043 }
 0x122   :  { %v228_v27 = vmul.f32 0.0, %v2044_v24 }
 0x182   :  { %v231_v25 = vpop.permute.xlu0 %230 }
 0x183   :  { %v233_v26 = vmul.f32 %v2044_v24, %v231_v25 }
 0x185   :  { %235 = vrot.lane.b32.xlu0 %v233_v26, %s2262_s4 }
 0x1f7   :  { %v236_v28 = vpop.permute.xlu0 %235 }
 0x1f8   :  { %v238_v29 = vadd.f32 %v236_v28, %v228_v27 }
 0x1fa   :  { %2045 = vtanh.f32 %v238_v29  ;;  %v304_v48 = vrot.slane %v238_v29, 6 }
 0x207   :  { %v2046_v30 = vpop.eup %2045 }
 0x208   :  { %241 = vrot.lane.b32.xlu1 %v2046_v30, %s2255_s26 }
 0x27a   :  { %v242_v31 = vpop.permute.xlu1 %241 }
 0x27b   :  { %v2399_v32 = vmul.f32 %v2044_v24, %v242_v31 }
 0x27d   :  { %v245_v33 = vpack.c.bf16 %v2399_v32, %v2399_v32 }
 0x27f   :  { %247 = vrot.lane.b32.xlu1 %v245_v33, %s2262_s4 }
 0x2f1   :  { %v248_v34 = vpop.permute.xlu1 %247 }
 0x2f2   :  { %1859 = vmatmul.mubr.msk.bf16.vlgmr.msra.gmra.mxu0 %vm176_vm2, %v248_v34 }
 0x2f3   :  { %1863 = vmatpush3.bf16.msra.mxu0 %v2366_v6  ;;  %1866 = vmatprep.mubr.msk.bf16.mxu0 %vm2260_vm0, %v2259_v0 }
 0x2f4   :  { %1864 = vmatprep.subr.bf16.mxu0 %v2259_v0 }
 0x2f7   :  { %1865 = vmatpush3.bf16.msra.mxu0 %v2369_v7 }
 0x2f8   :  { %1870 = vmatprep.subr.bf16.mxu0 %v2259_v0 }
 0x3b2   :  { %v286_v35 = vpop.f32.mrf.mxu0 }
 0x3b3   :  { %v293_v36 = vrot.slane %v286_v35, 6 }
 0x3b4   :  { %v1860_v37 = vpop.f32.mrf.mxu0 }
 0x3b5   :  { %v295_v38 = vadd.f32 %v293_v36, %v2393_v14 }
 0x3b6   :  { %v289_v39 = vpop.f32.mrf.mxu0 }
 0x3b7   :  { %2047 = vtanh.f32 %v295_v38  ;;  %v1728_v42 = vmul.f32 -1.442695, %v295_v38 }
 0x3b8   :  { %v1861_v40 = vpop.f32.mrf.mxu0 }
 0x3b9   :  { %2049 = vpow2.f32 %v1728_v42 }
 0x3c4   :  { %v2048_v41 = vpop.eup %2047 }
 0x3c5   :  { %308 = vrot.lane.b32.xlu0 %v2048_v41, %s2255_s26 }
 0x3c6   :  { %v2050_v43 = vpop.eup %2049 }
 0x3c7   :  { %v299_v44 = vadd.f32 1.0, %v2050_v43 }
 0x3c9   :  { %2051 = vrcp.f32 %v299_v44 }
 0x3d6   :  { %v2052_v45 = vpop.eup %2051 }
 0x3d7   :  { %v306_v49 = vmul.f32 %v2052_v45, %v304_v48 }
 0x437   :  { %v309_v46 = vpop.permute.xlu0 %308 }
 0x438   :  { %v311_v47 = vmul.f32 %v2052_v45, %v309_v46 }
 0x43a   :  { %313 = vrot.lane.b32.xlu1 %v311_v47, %s2262_s4 }
 0x4ac   :  { %v314_v50 = vpop.permute.xlu1 %313 }
 0x4ad   :  { %v316_v51 = vadd.f32 %v314_v50, %v306_v49 }
 0x4af   :  { %2053 = vtanh.f32 %v316_v51  ;;  %v383_v11 = vrot.slane %v316_v51, 6 }
 0x4bc   :  { %v2054_v52 = vpop.eup %2053 }
 0x4bd   :  { %319 = vrot.lane.b32.xlu0 %v2054_v52, %s2255_s26 }
 0x52f   :  { %v320_v53 = vpop.permute.xlu0 %319 }
 0x530   :  { %v322_v54 = vmul.f32 %v2052_v45, %v320_v53 }
 0x532   :  { %v323_v55 = vpack.c.bf16 %v322_v54, %v322_v54  ;;  %v794_v20 = vsel %vm793_vm3, %v2399_v32, %v322_v54 }
 0x534   :  { %v325_v56 = vrot.slane %v323_v55, 1 }
 0x536   :  { %326 = vrot.lane.b32.xlu1 %v325_v56, %s2262_s4 }
 0x5a8   :  { %v327_v57 = vpop.permute.xlu1 %326 }
 0x5a9   :  { %1867 = vmatmul.mubr.msk.bf16.vlgmr.msra.gmra.mxu0 %vm176_vm2, %v327_v57 }
 0x5aa   :  { %1871 = vmatpush3.bf16.msra.mxu0 %v2366_v6  ;;  %1874 = vmatprep.mubr.msk.bf16.mxu0 %vm2260_vm0, %v2259_v0 }
 0x5ab   :  { %1872 = vmatprep.subr.bf16.mxu0 %v2259_v0 }
 0x5ae   :  { %1873 = vmatpush3.bf16.msra.mxu0 %v2369_v7 }
 0x5af   :  { %1886 = vmatprep.subr.bf16.mxu0 %v2259_v0 }
 0x669   :  { %v365_v58 = vpop.f32.mrf.mxu0 }
 0x66a   :  { %v372_v59 = vrot.slane %v365_v58, 4 }
 0x66b   :  { %v1868_v60 = vpop.f32.mrf.mxu0 }
 0x66c   :  { %v374_v61 = vadd.f32 %v372_v59, %v2393_v14 }
 0x66d   :  { %v368_v62 = vpop.f32.mrf.mxu0 }
 0x66e   :  { %2055 = vtanh.f32 %v374_v61  ;;  %v1730_v3 = vmul.f32 -1.442695, %v374_v61 }
 0x66f   :  { %v1869_v63 = vpop.f32.mrf.mxu0 }
 0x670   :  { %2057 = vpow2.f32 %v1730_v3 }
 0x67b   :  { %v2056_v2 = vpop.eup %2055 }
 0x67c   :  { %387 = vrot.lane.b32.xlu0 %v2056_v2, %s2255_s26 }
 0x67d   :  { %v2058_v4 = vpop.eup %2057 }
 0x67e   :  { %v378_v5 = vadd.f32 1.0, %v2058_v4 }
 0x680   :  { %2059 = vrcp.f32 %v378_v5 }
 0x68d   :  { %v2060_v8 = vpop.eup %2059 }
 0x68e   :  { %v385_v13 = vmul.f32 %v2060_v8, %v383_v11 }
 0x6ee   :  { %v388_v9 = vpop.permute.xlu0 %387 }
 0x6ef   :  { %v390_v10 = vmul.f32 %v2060_v8, %v388_v9 }
 0x6f1   :  { %392 = vrot.lane.b32.xlu1 %v390_v10, %s2262_s4 }
 0x763   :  { %v393_v15 = vpop.permute.xlu1 %392 }
 0x764   :  { %v395_v16 = vadd.f32 %v393_v15, %v385_v13 }
 0x766   :  { %2061 = vtanh.f32 %v395_v16  ;;  %v462_v38 = vrot.slane %v395_v16, 6 }
 0x773   :  { %v2062_v17 = vpop.eup %2061 }
 0x774   :  { %398 = vrot.lane.b32.xlu0 %v2062_v17, %s2255_s26 }
 0x7e6   :  { %v399_v18 = vpop.permute.xlu0 %398 }
 0x7e7   :  { %v401_v19 = vmul.f32 %v2060_v8, %v399_v18 }
 0x7e9   :  { %v402_v21 = vpack.c.bf16 %v401_v19, %v401_v19  ;;  %v796_v22 = vsel %vm795_vm4, %v794_v20, %v401_v19 }
 0x7eb   :  { %v404_v23 = vrot.slane %v402_v21, 2 }
 0x7ed   :  { %405 = vrot.lane.b32.xlu1 %v404_v23, %s2262_s4 }
 0x85f   :  { %v406_v24 = vpop.permute.xlu1 %405 }
 0x860   :  { %1875 = vmatmul.mubr.msk.bf16.vlgmr.msra.gmra.mxu0 %vm176_vm2, %v406_v24 }
 0x861   :  { %1887 = vmatpush3.bf16.msra.mxu0 %v2366_v6  ;;  %1890 = vmatprep.mubr.msk.bf16.mxu0 %vm2260_vm0, %v2259_v0 }
 0x862   :  { %1888 = vmatprep.subr.bf16.mxu0 %v2259_v0 }
 0x865   :  { %1889 = vmatpush3.bf16.msra.mxu0 %v2369_v7 }
 0x866   :  { %1902 = vmatprep.subr.bf16.mxu0 %v2259_v0 }
 0x920   :  { %v444_v25 = vpop.f32.mrf.mxu0 }
 0x921   :  { %v451_v26 = vrot.slane %v444_v25, 2 }
 0x922   :  { %v1876_v27 = vpop.f32.mrf.mxu0 }
 0x923   :  { %v453_v28 = vadd.f32 %v451_v26, %v2393_v14 }
 0x924   :  { %v447_v29 = vpop.f32.mrf.mxu0 }
 0x925   :  { %2063 = vtanh.f32 %v453_v28  ;;  %v1732_v32 = vmul.f32 -1.442695, %v453_v28 }
 0x926   :  { %v1877_v30 = vpop.f32.mrf.mxu0 }
 0x927   :  { %2065 = vpow2.f32 %v1732_v32 }
 0x932   :  { %v2064_v31 = vpop.eup %2063 }
 0x933   :  { %466 = vrot.lane.b32.xlu0 %v2064_v31, %s2255_s26 }
 0x934   :  { %v2066_v33 = vpop.eup %2065 }
 0x935   :  { %v457_v34 = vadd.f32 1.0, %v2066_v33 }
 0x937   :  { %2067 = vrcp.f32 %v457_v34 }
 0x944   :  { %v2068_v35 = vpop.eup %2067 }
 0x945   :  { %v464_v39 = vmul.f32 %v2068_v35, %v462_v38 }
 0x9a5   :  { %v467_v36 = vpop.permute.xlu0 %466 }
 0x9a6   :  { %v469_v37 = vmul.f32 %v2068_v35, %v467_v36 }
 0x9a8   :  { %471 = vrot.lane.b32.xlu1 %v469_v37, %s2262_s4 }
 0xa1a   :  { %v472_v40 = vpop.permute.xlu1 %471 }
 0xa1b   :  { %v474_v14 = vadd.f32 %v472_v40, %v464_v39 }
 0xa1d   :  { %2069 = vtanh.f32 %v474_v14  ;;  %v538_v60 = vrot.slane %v474_v14, 6 }
 0xa2a   :  { %v2070_v41 = vpop.eup %2069 }
 0xa2b   :  { %477 = vrot.lane.b32.xlu0 %v2070_v41, %s2255_s26 }
 0xa9d   :  { %v478_v42 = vpop.permute.xlu0 %477 }
 0xa9e   :  { %v480_v43 = vmul.f32 %v2068_v35, %v478_v42 }
 0xaa0   :  { %v481_v44 = vpack.c.bf16 %v480_v43, %v480_v43  ;;  %v2443_v45 = vsel %vm797_vm5, %v796_v22, %v480_v43 }
 0xaa2   :  { %v483_v46 = vrot.slane %v481_v44, 3 }
 0xaa4   :  { %484 = vrot.lane.b32.xlu1 %v483_v46, %s2262_s4 }
 0xb16   :  { %v485_v47 = vpop.permute.xlu1 %484 }
 0xb17   :  { %1883 = vmatmul.mubr.msk.bf16.vlgmr.msra.gmra.mxu1 %vm176_vm2, %v485_v47 }
 0xb18   :  { %1895 = vmatpush3.bf16.msra.mxu1 %v2366_v6  ;;  %1898 = vmatprep.mubr.msk.bf16.mxu1 %vm2260_vm0, %v2259_v0 }
 0xb19   :  { %1896 = vmatprep.subr.bf16.mxu1 %v2259_v0 }
 0xb1c   :  { %1897 = vmatpush3.bf16.msra.mxu1 %v2369_v7 }
 0xb1d   :  { %1910 = vmatprep.subr.bf16.mxu1 %v2259_v0 }
 0xbd7   :  { %v523_v48 = vpop.f32.mrf.mxu1 }
 0xbd8   :  { %v529_v49 = vadd.f32 %v523_v48, %v2391_v12 }
 0xbd9   :  { %v1884_v50 = vpop.f32.mrf.mxu1 }
 0xbda   :  { %2071 = vtanh.f32 %v529_v49  ;;  %v1734_v54 = vmul.f32 -1.442695, %v529_v49 }
 0xbdb   :  { %v526_v51 = vpop.f32.mrf.mxu1 }
 0xbdc   :  { %2073 = vpow2.f32 %v1734_v54 }
 0xbdd   :  { %v1885_v52 = vpop.f32.mrf.mxu1 }
 0xbe7   :  { %v2072_v53 = vpop.eup %2071 }
 0xbe8   :  { %542 = vrot.lane.b32.xlu0 %v2072_v53, %s2255_s26 }
 0xbe9   :  { %v2074_v55 = vpop.eup %2073 }
 0xbea   :  { %v533_v56 = vadd.f32 1.0, %v2074_v55 }
 0xbec   :  { %2075 = vrcp.f32 %v533_v56 }
 0xbf9   :  { %v2076_v57 = vpop.eup %2075 }
 0xbfa   :  { %v540_v61 = vmul.f32 %v2076_v57, %v538_v60 }
 0xc5a   :  { %v543_v58 = vpop.permute.xlu0 %542 }
 0xc5b   :  { %v545_v59 = vmul.f32 %v2076_v57, %v543_v58 }
 0xc5d   :  { %547 = vrot.lane.b32.xlu1 %v545_v59, %s2262_s4 }
 0xccf   :  { %v548_v62 = vpop.permute.xlu1 %547 }
 0xcd0   :  { %v550_v63 = vadd.f32 %v548_v62, %v540_v61 }
 0xcd2   :  { %2077 = vtanh.f32 %v550_v63  ;;  %v616_v22 = vrot.slane %v550_v63, 6 }
 0xcdf   :  { %v2078_v2 = vpop.eup %2077 }
 0xce0   :  { %553 = vrot.lane.b32.xlu0 %v2078_v2, %s2255_s26 }
 0xd52   :  { %v554_v3 = vpop.permute.xlu0 %553 }
 0xd53   :  { %v2457_v4 = vmul.f32 %v2076_v57, %v554_v3 }
 0xd55   :  { %v557_v5 = vpack.c.bf16 %v2457_v4, %v2457_v4 }
 0xd57   :  { %559 = vrot.lane.b32.xlu1 %v557_v5, %s2262_s4 }
 0xdc9   :  { %v560_v8 = vpop.permute.xlu1 %559 }
 0xdca   :  { %1891 = vmatmul.mubr.msk.bf16.vlgmr.msra.gmra.mxu0 %vm176_vm2, %v560_v8 }
 0xdcb   :  { %1903 = vmatpush3.bf16.msra.mxu0 %v2366_v6  ;;  %1906 = vmatprep.mubr.msk.bf16.mxu0 %vm2260_vm0, %v2259_v0 }
 0xdcc   :  { %1904 = vmatprep.subr.bf16.mxu0 %v2259_v0 }
 0xdcf   :  { %1905 = vmatpush3.bf16.msra.mxu0 %v2369_v7 }
 0xdd0   :  { %1918 = vmatprep.subr.bf16.mxu0 %v2259_v0 }
 0xe8a   :  { %v598_v9 = vpop.f32.mrf.mxu0 }
 0xe8b   :  { %v605_v10 = vrot.slane %v598_v9, 6 }
 0xe8c   :  { %v1892_v11 = vpop.f32.mrf.mxu0 }
 0xe8d   :  { %v607_v13 = vadd.f32 %v605_v10, %v2391_v12 }
 0xe8e   :  { %v601_v15 = vpop.f32.mrf.mxu0 }
 0xe8f   :  { %2079 = vtanh.f32 %v607_v13  ;;  %v1736_v6 = vmul.f32 -1.442695, %v607_v13  ;;  %v2491_v15 = vld [vmem:[#allocation7 + $0x8] sm:$0xff]  }
 0xe90   :  { %v1893_v16 = vpop.f32.mrf.mxu0 }
 0xe91   :  { %2081 = vpow2.f32 %v1736_v6  ;;  %v2026_v16 = vld [vmem:[#allocation6 + $0x8] sm:$0xff]   ;;  %v2028_v6 = vld [vmem:[#allocation6] sm:$0xff]  }
 0xe9c   :  { %v2080_v17 = vpop.eup %2079 }
 0xe9d   :  { %620 = vrot.lane.b32.xlu0 %v2080_v17, %s2255_s26  ;;  %v2494_v17 = vld [vmem:[#allocation7] sm:$0xff]  }
 0xe9e   :  { %v2082_v18 = vpop.eup %2081 }
 0xe9f   :  { %v611_v19 = vadd.f32 1.0, %v2082_v18 }
 0xea1   :  { %2083 = vrcp.f32 %v611_v19 }
 0xeae   :  { %v2084_v20 = vpop.eup %2083 }
 0xeaf   :  { %v618_v23 = vmul.f32 %v2084_v20, %v616_v22 }
 0xf0f   :  { %v621_v7 = vpop.permute.xlu0 %620 }
 0xf10   :  { %v623_v21 = vmul.f32 %v2084_v20, %v621_v7 }
 0xf12   :  { %625 = vrot.lane.b32.xlu1 %v623_v21, %s2262_s4 }
 0xf84   :  { %v626_v24 = vpop.permute.xlu1 %625 }
 0xf85   :  { %v628_v25 = vadd.f32 %v626_v24, %v618_v23 }
 0xf87   :  { %2085 = vtanh.f32 %v628_v25  ;;  %v695_v44 = vrot.slane %v628_v25, 6 }
 0xf94   :  { %v2086_v26 = vpop.eup %2085 }
 0xf95   :  { %631 = vrot.lane.b32.xlu0 %v2086_v26, %s2255_s26 }
0x1007   :  { %v632_v27 = vpop.permute.xlu0 %631 }
0x1008   :  { %v634_v28 = vmul.f32 %v2084_v20, %v632_v27 }
0x100a   :  { %v635_v29 = vpack.c.bf16 %v634_v28, %v634_v28  ;;  %v799_v52 = vsel %vm793_vm3, %v2457_v4, %v634_v28 }
0x100c   :  { %v637_v30 = vrot.slane %v635_v29, 1 }
0x100e   :  { %638 = vrot.lane.b32.xlu1 %v637_v30, %s2262_s4 }
0x1080   :  { %v639_v31 = vpop.permute.xlu1 %638 }
0x1081   :  { %1899 = vmatmul.mubr.msk.bf16.vlgmr.msra.gmra.mxu1 %vm176_vm2, %v639_v31 }
0x1082   :  { %1914 = vmatprep.mubr.msk.bf16.mxu1 %vm2260_vm0, %v2259_v0  ;;  %1911 = vmatpush3.bf16.msra.mxu1 %v2026_v16 }
0x1083   :  { %1912 = vmatprep.subr.bf16.mxu1 %v2259_v0 }
0x1086   :  { %1913 = vmatpush3.bf16.msra.mxu1 %v2028_v6 }
0x1087   :  { %1926 = vmatprep.subr.bf16.mxu1 %v2259_v0 }
0x1141   :  { %v677_v32 = vpop.f32.mrf.mxu1 }
0x1142   :  { %v684_v33 = vrot.slane %v677_v32, 4 }
0x1143   :  { %v1900_v34 = vpop.f32.mrf.mxu1 }
0x1144   :  { %v686_v35 = vadd.f32 %v684_v33, %v2391_v12 }
0x1145   :  { %v680_v36 = vpop.f32.mrf.mxu1 }
0x1146   :  { %2087 = vtanh.f32 %v686_v35  ;;  %v1738_v39 = vmul.f32 -1.442695, %v686_v35 }
0x1147   :  { %v1901_v37 = vpop.f32.mrf.mxu1 }
0x1148   :  { %2089 = vpow2.f32 %v1738_v39 }
0x1153   :  { %v2088_v38 = vpop.eup %2087 }
0x1154   :  { %699 = vrot.lane.b32.xlu0 %v2088_v38, %s2255_s26 }
0x1155   :  { %v2090_v40 = vpop.eup %2089 }
0x1156   :  { %v690_v14 = vadd.f32 1.0, %v2090_v40 }
0x1158   :  { %2091 = vrcp.f32 %v690_v14 }
0x1165   :  { %v2092_v41 = vpop.eup %2091 }
0x1166   :  { %v697_v46 = vmul.f32 %v2092_v41, %v695_v44 }
0x11c6   :  { %v700_v42 = vpop.permute.xlu0 %699 }
0x11c7   :  { %v702_v43 = vmul.f32 %v2092_v41, %v700_v42 }
0x11c9   :  { %704 = vrot.lane.b32.xlu1 %v702_v43, %s2262_s4 }
0x123b   :  { %v705_v47 = vpop.permute.xlu1 %704 }
0x123c   :  { %v707_v48 = vadd.f32 %v705_v47, %v697_v46 }
0x123e   :  { %2093 = vtanh.f32 %v707_v48  ;;  %v774_v10 = vrot.slane %v707_v48, 6 }
0x124b   :  { %v2094_v49 = vpop.eup %2093 }
0x124c   :  { %710 = vrot.lane.b32.xlu0 %v2094_v49, %s2255_s26 }
0x12be   :  { %v711_v50 = vpop.permute.xlu0 %710 }
0x12bf   :  { %v713_v51 = vmul.f32 %v2092_v41, %v711_v50 }
0x12c1   :  { %v714_v53 = vpack.c.bf16 %v713_v51, %v713_v51  ;;  %v800_v54 = vsel %vm795_vm4, %v799_v52, %v713_v51 }
0x12c3   :  { %v716_v55 = vrot.slane %v714_v53, 2 }
0x12c5   :  { %717 = vrot.lane.b32.xlu1 %v716_v55, %s2262_s4 }
0x1337   :  { %v718_v56 = vpop.permute.xlu1 %717 }
0x1338   :  { %1907 = vmatmul.mubr.msk.bf16.vlgmr.msra.gmra.mxu0 %vm176_vm2, %v718_v56 }
0x1339   :  { %1922 = vmatprep.mubr.msk.bf16.mxu0 %vm2260_vm0, %v2259_v0  ;;  %1919 = vmatpush3.bf16.msra.mxu0 %v2491_v15 }
0x133a   :  { %1920 = vmatprep.subr.bf16.mxu0 %v2259_v0 }
0x133d   :  { %1921 = vmatpush3.bf16.msra.mxu0 %v2494_v17 }
0x133e   :  { %1934 = vmatprep.subr.bf16.mxu0 %v2259_v0 }
0x1340   :  { %1923 = vmatmul.mubr.bf16.vlgmr.msra.gmra.mxu0 %v2261_v1 }
0x1341   :  { %1935 = vmatpush3.bf16.msra.mxu0 %v2491_v15  ;;  %1938 = vmatprep.mubr.msk.bf16.mxu0 %vm2260_vm0, %v2259_v0 }
0x1342   :  { %1936 = vmatprep.subr.bf16.mxu0 %v2259_v0 }
0x1345   :  { %1937 = vmatpush3.bf16.msra.mxu0 %v2494_v17 }
0x1346   :  { %1950 = vmatprep.subr.bf16.mxu0 %v2259_v0 }
0x13f8   :  { %v756_v57 = vpop.f32.mrf.mxu0 }
0x13f9   :  { %v763_v58 = vrot.slane %v756_v57, 2 }
0x13fa   :  { %v1908_v59 = vpop.f32.mrf.mxu0 }
0x13fb   :  { %v765_v60 = vadd.f32 %v763_v58, %v2391_v12 }
0x13fc   :  { %v759_v61 = vpop.f32.mrf.mxu0 }
0x13fd   :  { %2095 = vtanh.f32 %v765_v60  ;;  %v1740_v2 = vmul.f32 -1.442695, %v765_v60 }
0x13fe   :  { %v1909_v62 = vpop.f32.mrf.mxu0 }
0x13ff   :  { %2097 = vpow2.f32 %v1740_v2 }
0x1400   :  { %v923_v1 = vpop.f32.mrf.mxu0 }
0x1402   :  { %v1924_v22 = vpop.f32.mrf.mxu0 }
0x1404   :  { %v926_v23 = vpop.f32.mrf.mxu0 }
0x1406   :  { %v1925_v24 = vpop.f32.mrf.mxu0 }
0x140a   :  { %v2096_v63 = vpop.eup %2095 }
0x140b   :  { %778 = vrot.lane.b32.xlu0 %v2096_v63, %s2255_s26 }
0x140c   :  { %v2098_v3 = vpop.eup %2097 }
0x140d   :  { %v769_v4 = vadd.f32 1.0, %v2098_v3 }
0x140f   :  { %2099 = vrcp.f32 %v769_v4 }
0x141c   :  { %v2100_v5 = vpop.eup %2099 }
0x141d   :  { %v776_v11 = vmul.f32 %v2100_v5, %v774_v10 }
0x147d   :  { %v779_v8 = vpop.permute.xlu0 %778 }
0x147e   :  { %v781_v9 = vmul.f32 %v2100_v5, %v779_v8 }
0x1480   :  { %783 = vrot.lane.b32.xlu1 %v781_v9, %s2262_s4 }
0x14f2   :  { %v784_v13 = vpop.permute.xlu1 %783 }
0x14f3   :  { %v786_v12 = vadd.f32 %v784_v13, %v776_v11 }
0x14f5   :  { %2101 = vtanh.f32 %v786_v12 }
0x1502   :  { %v2102_v18 = vpop.eup %2101 }
0x1503   :  { %789 = vrot.lane.b32.xlu0 %v2102_v18, %s2255_s26 }
0x1575   :  { %v790_v19 = vpop.permute.xlu0 %789 }
0x1576   :  { %v792_v20 = vmul.f32 %v2100_v5, %v790_v19 }
0x1578   :  { %v801_v7 = vsel %vm797_vm5, %v800_v54, %v792_v20 }
0x1579   :  { %v811_v21 = vpack.c.bf16 %v801_v7, %v2443_v45  ;;  %v1741_v45 = vld [vmem:[%s2690_s7] ss:$0 sm:$0xff] }
0x157b   :  { %819 = vrot.lane.b32.xlu1 %v811_v21, %s2262_s4 }
0x15ed   :  { %v820_v25 = vpop.permute.xlu1 %819 }
0x15ee   :  { %1915 = vmatmul.mubr.msk.bf16.vlgmr.msra.gmra.mxu1 %vm176_vm2, %v820_v25 }
0x15ef   :  { %1927 = vmatpush3.bf16.msra.mxu1 %v2491_v15  ;;  %1930 = vmatprep.mubr.msk.bf16.mxu1 %vm2260_vm0, %v2259_v0 }
0x15f0   :  { %1928 = vmatprep.subr.bf16.mxu1 %v2259_v0 }
0x15f3   :  { %1929 = vmatpush3.bf16.msra.mxu1 %v2494_v17 }
0x15f4   :  { %1942 = vmatprep.subr.bf16.mxu1 %v2259_v0 }
0x16ae   :  { %v870_v26 = vpop.f32.mrf.mxu1 }
0x16af   :  { %v2522_v27 = vadd.f32 %v1741_v45, %v870_v26 }
0x16b0   :  { %v1916_v28 = vpop.f32.mrf.mxu1 }
0x16b1   :  { %v929_v29 = vadd.f32 %v923_v1, %v2522_v27 }
0x16b2   :  { %v873_v30 = vpop.f32.mrf.mxu1 }
0x16b3   :  { %2103 = vtanh.f32 %v929_v29  ;;  %v2525_v31 = vadd.f32 %v1741_v45, %v873_v30  ;;  %v1747_v34 = vmul.f32 -1.442695, %v929_v29 }
0x16b4   :  { %v1917_v32 = vpop.f32.mrf.mxu1 }
0x16b5   :  { %2105 = vpow2.f32 %v1747_v34 }
0x16c0   :  { %v2104_v33 = vpop.eup %2103 }
0x16c1   :  { %939 = vrot.lane.b32.xlu0 %v2104_v33, %s2255_s26 }
0x16c2   :  { %v2106_v35 = vpop.eup %2105 }
0x16c3   :  { %v933_v36 = vadd.f32 1.0, %v2106_v35 }
0x16c5   :  { %2107 = vrcp.f32 %v933_v36 }
0x16d2   :  { %v2108_v37 = vpop.eup %2107 }
0x16d3   :  { %v937_v40 = vmul.f32 0.0, %v2108_v37 }
0x1733   :  { %v940_v38 = vpop.permute.xlu0 %939 }
0x1734   :  { %v942_v39 = vmul.f32 %v2108_v37, %v940_v38 }
0x1736   :  { %944 = vrot.lane.b32.xlu1 %v942_v39, %s2262_s4 }
0x17a8   :  { %v945_v14 = vpop.permute.xlu1 %944 }
0x17a9   :  { %v947_v41 = vadd.f32 %v945_v14, %v937_v40 }
0x17ab   :  { %2109 = vtanh.f32 %v947_v41  ;;  %v1013_v61 = vrot.slane %v947_v41, 6 }
0x17b8   :  { %v2110_v42 = vpop.eup %2109 }
0x17b9   :  { %950 = vrot.lane.b32.xlu0 %v2110_v42, %s2255_s26 }
0x182b   :  { %v951_v43 = vpop.permute.xlu0 %950 }
0x182c   :  { %v2530_v44 = vmul.f32 %v2108_v37, %v951_v43 }
0x182e   :  { %v954_v46 = vpack.c.bf16 %v2530_v44, %v2530_v44 }
0x1830   :  { %956 = vrot.lane.b32.xlu1 %v954_v46, %s2262_s4 }
0x18a2   :  { %v957_v47 = vpop.permute.xlu1 %956 }
0x18a3   :  { %1931 = vmatmul.mubr.msk.bf16.vlgmr.msra.gmra.mxu1 %vm176_vm2, %v957_v47 }
0x18a4   :  { %1943 = vmatpush3.bf16.msra.mxu1 %v2491_v15  ;;  %1946 = vmatprep.mubr.msk.bf16.mxu1 %vm2260_vm0, %v2259_v0 }
0x18a5   :  { %1944 = vmatprep.subr.bf16.mxu1 %v2259_v0 }
0x18a8   :  { %1945 = vmatpush3.bf16.msra.mxu1 %v2494_v17 }
0x18a9   :  { %1958 = vmatprep.subr.bf16.mxu1 %v2259_v0 }
0x1963   :  { %v995_v48 = vpop.f32.mrf.mxu1 }
0x1964   :  { %v1002_v49 = vrot.slane %v995_v48, 6 }
0x1965   :  { %v1932_v50 = vpop.f32.mrf.mxu1 }
0x1966   :  { %v1004_v51 = vadd.f32 %v1002_v49, %v2522_v27 }
0x1967   :  { %v998_v52 = vpop.f32.mrf.mxu1 }
0x1968   :  { %2111 = vtanh.f32 %v1004_v51  ;;  %v1749_v55 = vmul.f32 -1.442695, %v1004_v51 }
0x1969   :  { %v1933_v53 = vpop.f32.mrf.mxu1 }
0x196a   :  { %2113 = vpow2.f32 %v1749_v55 }
0x1975   :  { %v2112_v54 = vpop.eup %2111 }
0x1976   :  { %1017 = vrot.lane.b32.xlu0 %v2112_v54, %s2255_s26 }
0x1977   :  { %v2114_v56 = vpop.eup %2113 }
0x1978   :  { %v1008_v57 = vadd.f32 1.0, %v2114_v56 }
0x197a   :  { %2115 = vrcp.f32 %v1008_v57 }
0x1987   :  { %v2116_v58 = vpop.eup %2115 }
0x1988   :  { %v1015_v62 = vmul.f32 %v2116_v58, %v1013_v61 }
0x19e8   :  { %v1018_v59 = vpop.permute.xlu0 %1017 }
0x19e9   :  { %v1020_v60 = vmul.f32 %v2116_v58, %v1018_v59 }
0x19eb   :  { %1022 = vrot.lane.b32.xlu1 %v1020_v60, %s2262_s4 }
0x1a5d   :  { %v1023_v63 = vpop.permute.xlu1 %1022 }
0x1a5e   :  { %v1025_v2 = vadd.f32 %v1023_v63, %v1015_v62 }
0x1a60   :  { %2117 = vtanh.f32 %v1025_v2  ;;  %v1092_v24 = vrot.slane %v1025_v2, 6 }
0x1a6d   :  { %v2118_v3 = vpop.eup %2117 }
0x1a6e   :  { %1028 = vrot.lane.b32.xlu0 %v2118_v3, %s2255_s26 }
0x1ae0   :  { %v1029_v4 = vpop.permute.xlu0 %1028 }
0x1ae1   :  { %v1031_v5 = vmul.f32 %v2116_v58, %v1029_v4 }
0x1ae3   :  { %v1032_v8 = vpack.c.bf16 %v1031_v5, %v1031_v5  ;;  %v1502_v32 = vsel %vm793_vm3, %v2530_v44, %v1031_v5 }
0x1ae5   :  { %v1034_v9 = vrot.slane %v1032_v8, 1 }
0x1ae7   :  { %1035 = vrot.lane.b32.xlu1 %v1034_v9, %s2262_s4 }
0x1b59   :  { %v1036_v10 = vpop.permute.xlu1 %1035 }
0x1b5a   :  { %1939 = vmatmul.mubr.msk.bf16.vlgmr.msra.gmra.mxu0 %vm176_vm2, %v1036_v10 }
0x1b5b   :  { %1951 = vmatpush3.bf16.msra.mxu0 %v2491_v15  ;;  %1954 = vmatprep.mubr.msk.bf16.mxu0 %vm2260_vm0, %v2259_v0 }
0x1b5c   :  { %1952 = vmatprep.subr.bf16.mxu0 %v2259_v0 }
0x1b5f   :  { %1953 = vmatpush3.bf16.msra.mxu0 %v2494_v17 }
0x1b60   :  { %1966 = vmatprep.subr.bf16.mxu0 %v2259_v0 }
0x1c1a   :  { %v1074_v11 = vpop.f32.mrf.mxu0 }
0x1c1b   :  { %v1081_v13 = vrot.slane %v1074_v11, 4 }
0x1c1c   :  { %v1940_v12 = vpop.f32.mrf.mxu0 }
0x1c1d   :  { %v1083_v16 = vadd.f32 %v1081_v13, %v2522_v27 }
0x1c1e   :  { %v1077_v6 = vpop.f32.mrf.mxu0 }
0x1c1f   :  { %2119 = vtanh.f32 %v1083_v16  ;;  %v1751_v20 = vmul.f32 -1.442695, %v1083_v16 }
0x1c20   :  { %v1941_v18 = vpop.f32.mrf.mxu0 }
0x1c21   :  { %2121 = vpow2.f32 %v1751_v20 }
0x1c2c   :  { %v2120_v19 = vpop.eup %2119 }
0x1c2d   :  { %1096 = vrot.lane.b32.xlu0 %v2120_v19, %s2255_s26 }
0x1c2e   :  { %v2122_v7 = vpop.eup %2121 }
0x1c2f   :  { %v1087_v21 = vadd.f32 1.0, %v2122_v7 }
0x1c31   :  { %2123 = vrcp.f32 %v1087_v21 }
0x1c3e   :  { %v2124_v1 = vpop.eup %2123 }
0x1c3f   :  { %v1094_v25 = vmul.f32 %v2124_v1, %v1092_v24 }
0x1c9f   :  { %v1097_v22 = vpop.permute.xlu0 %1096 }
0x1ca0   :  { %v1099_v23 = vmul.f32 %v2124_v1, %v1097_v22 }
0x1ca2   :  { %1101 = vrot.lane.b32.xlu1 %v1099_v23, %s2262_s4 }
0x1d14   :  { %v1102_v45 = vpop.permute.xlu1 %1101 }
0x1d15   :  { %v1104_v26 = vadd.f32 %v1102_v45, %v1094_v25 }
0x1d17   :  { %2125 = vtanh.f32 %v1104_v26  ;;  %v1171_v50 = vrot.slane %v1104_v26, 6 }
0x1d24   :  { %v2126_v28 = vpop.eup %2125 }
0x1d25   :  { %1107 = vrot.lane.b32.xlu0 %v2126_v28, %s2255_s26 }
0x1d97   :  { %v1108_v29 = vpop.permute.xlu0 %1107 }
0x1d98   :  { %v1110_v30 = vmul.f32 %v2124_v1, %v1108_v29 }
0x1d9a   :  { %v1111_v33 = vpack.c.bf16 %v1110_v30, %v1110_v30  ;;  %v1503_v34 = vsel %vm795_vm4, %v1502_v32, %v1110_v30 }
0x1d9c   :  { %v1113_v35 = vrot.slane %v1111_v33, 2 }
0x1d9e   :  { %1114 = vrot.lane.b32.xlu1 %v1113_v35, %s2262_s4 }
0x1e10   :  { %v1115_v36 = vpop.permute.xlu1 %1114 }
0x1e11   :  { %1947 = vmatmul.mubr.msk.bf16.vlgmr.msra.gmra.mxu1 %vm176_vm2, %v1115_v36 }
0x1e12   :  { %1959 = vmatpush3.bf16.msra.mxu1 %v2491_v15  ;;  %1962 = vmatprep.mubr.msk.bf16.mxu1 %vm2260_vm0, %v2259_v0 }
0x1e13   :  { %1960 = vmatprep.subr.bf16.mxu1 %v2259_v0 }
0x1e16   :  { %1961 = vmatpush3.bf16.msra.mxu1 %v2494_v17 }
0x1e17   :  { %1974 = vmatprep.subr.bf16.mxu1 %v2259_v0 }
0x1ed1   :  { %v1153_v37 = vpop.f32.mrf.mxu1 }
0x1ed2   :  { %v1160_v38 = vrot.slane %v1153_v37, 2 }
0x1ed3   :  { %v1948_v39 = vpop.f32.mrf.mxu1 }
0x1ed4   :  { %v1162_v40 = vadd.f32 %v1160_v38, %v2522_v27 }
0x1ed5   :  { %v1156_v14 = vpop.f32.mrf.mxu1 }
0x1ed6   :  { %2127 = vtanh.f32 %v1162_v40  ;;  %v1753_v43 = vmul.f32 -1.442695, %v1162_v40 }
0x1ed7   :  { %v1949_v41 = vpop.f32.mrf.mxu1 }
0x1ed8   :  { %2129 = vpow2.f32 %v1753_v43 }
0x1ee3   :  { %v2128_v42 = vpop.eup %2127 }
0x1ee4   :  { %1175 = vrot.lane.b32.xlu0 %v2128_v42, %s2255_s26 }
0x1ee5   :  { %v2130_v44 = vpop.eup %2129 }
0x1ee6   :  { %v1166_v46 = vadd.f32 1.0, %v2130_v44 }
0x1ee8   :  { %2131 = vrcp.f32 %v1166_v46 }
0x1ef5   :  { %v2132_v47 = vpop.eup %2131 }
0x1ef6   :  { %v1173_v51 = vmul.f32 %v2132_v47, %v1171_v50 }
0x1f56   :  { %v1176_v48 = vpop.permute.xlu0 %1175 }
0x1f57   :  { %v1178_v49 = vmul.f32 %v2132_v47, %v1176_v48 }
0x1f59   :  { %1180 = vrot.lane.b32.xlu1 %v1178_v49, %s2262_s4 }
0x1fcb   :  { %v1181_v52 = vpop.permute.xlu1 %1180 }
0x1fcc   :  { %v1183_v27 = vadd.f32 %v1181_v52, %v1173_v51 }
0x1fce   :  { %2133 = vtanh.f32 %v1183_v27  ;;  %v1247_v13 = vrot.slane %v1183_v27, 6 }
0x1fdb   :  { %v2134_v53 = vpop.eup %2133 }
0x1fdc   :  { %1186 = vrot.lane.b32.xlu0 %v2134_v53, %s2255_s26 }
0x204e   :  { %v1187_v54 = vpop.permute.xlu0 %1186 }
0x204f   :  { %v1189_v55 = vmul.f32 %v2132_v47, %v1187_v54 }
0x2051   :  { %v1190_v56 = vpack.c.bf16 %v1189_v55, %v1189_v55  ;;  %v2574_v57 = vsel %vm797_vm5, %v1503_v34, %v1189_v55 }
0x2053   :  { %v1192_v58 = vrot.slane %v1190_v56, 3 }
0x2055   :  { %1193 = vrot.lane.b32.xlu1 %v1192_v58, %s2262_s4 }
0x20c7   :  { %v1194_v59 = vpop.permute.xlu1 %1193 }
0x20c8   :  { %1955 = vmatmul.mubr.msk.bf16.vlgmr.msra.gmra.mxu0 %vm176_vm2, %v1194_v59 }
0x20c9   :  { %1967 = vmatpush3.bf16.msra.mxu0 %v2491_v15  ;;  %1970 = vmatprep.mubr.msk.bf16.mxu0 %vm2260_vm0, %v2259_v0 }
0x20ca   :  { %1968 = vmatprep.subr.bf16.mxu0 %v2259_v0 }
0x20cd   :  { %1969 = vmatpush3.bf16.msra.mxu0 %v2494_v17 }
0x20ce   :  { %1982 = vmatprep.subr.bf16.mxu0 %v2259_v0 }
0x2188   :  { %v1232_v60 = vpop.f32.mrf.mxu0 }
0x2189   :  { %v1238_v61 = vadd.f32 %v1232_v60, %v2525_v31 }
0x218a   :  { %v1956_v62 = vpop.f32.mrf.mxu0 }
0x218b   :  { %2135 = vtanh.f32 %v1238_v61  ;;  %v1755_v4 = vmul.f32 -1.442695, %v1238_v61 }
0x218c   :  { %v1235_v63 = vpop.f32.mrf.mxu0 }
0x218d   :  { %2137 = vpow2.f32 %v1755_v4 }
0x218e   :  { %v1957_v2 = vpop.f32.mrf.mxu0 }
0x2198   :  { %v2136_v3 = vpop.eup %2135 }
0x2199   :  { %1251 = vrot.lane.b32.xlu0 %v2136_v3, %s2255_s26 }
0x219a   :  { %v2138_v5 = vpop.eup %2137 }
0x219b   :  { %v1242_v8 = vadd.f32 1.0, %v2138_v5 }
0x219d   :  { %2139 = vrcp.f32 %v1242_v8 }
0x21aa   :  { %v2140_v9 = vpop.eup %2139 }
0x21ab   :  { %v1249_v12 = vmul.f32 %v2140_v9, %v1247_v13 }
0x220b   :  { %v1252_v10 = vpop.permute.xlu0 %1251 }
0x220c   :  { %v1254_v11 = vmul.f32 %v2140_v9, %v1252_v10 }
0x220e   :  { %1256 = vrot.lane.b32.xlu1 %v1254_v11, %s2262_s4 }
0x2280   :  { %v1257_v16 = vpop.permute.xlu1 %1256 }
0x2281   :  { %v1259_v6 = vadd.f32 %v1257_v16, %v1249_v12 }
0x2283   :  { %2141 = vtanh.f32 %v1259_v6  ;;  %v1325_v33 = vrot.slane %v1259_v6, 6  ;;  %v1508_v6 = vld [vmem:[%s2684_s1] sm:$0xff] }
0x2290   :  { %v2142_v18 = vpop.eup %2141 }
0x2291   :  { %1262 = vrot.lane.b32.xlu0 %v2142_v18, %s2255_s26 }
0x2303   :  { %v1263_v19 = vpop.permute.xlu0 %1262 }
0x2304   :  { %v2588_v20 = vmul.f32 %v2140_v9, %v1263_v19 }
0x2306   :  { %v1266_v7 = vpack.c.bf16 %v2588_v20, %v2588_v20 }
0x2308   :  { %1268 = vrot.lane.b32.xlu1 %v1266_v7, %s2262_s4 }
0x237a   :  { %v1269_v21 = vpop.permute.xlu1 %1268 }
0x237b   :  { %1963 = vmatmul.mubr.msk.bf16.vlgmr.msra.gmra.mxu1 %vm176_vm2, %v1269_v21 }
0x237c   :  { %1975 = vmatpush3.bf16.msra.mxu1 %v2491_v15  ;;  %1978 = vmatprep.mubr.msk.bf16.mxu1 %vm2260_vm0, %v2259_v0 }
0x237d   :  { %1976 = vmatprep.subr.bf16.mxu1 %v2259_v0 }
0x2380   :  { %1977 = vmatpush3.bf16.msra.mxu1 %v2494_v17 }
0x2381   :  { %1990 = vmatprep.subr.bf16.mxu1 %v2259_v0 }
0x243b   :  { %v1307_v1 = vpop.f32.mrf.mxu1 }
0x243c   :  { %v1314_v22 = vrot.slane %v1307_v1, 6 }
0x243d   :  { %v1964_v23 = vpop.f32.mrf.mxu1 }
0x243e   :  { %v1316_v24 = vadd.f32 %v1314_v22, %v2525_v31 }
0x243f   :  { %v1310_v25 = vpop.f32.mrf.mxu1 }
0x2440   :  { %2143 = vtanh.f32 %v1316_v24  ;;  %v1757_v15 = vmul.f32 -1.442695, %v1316_v24 }
0x2441   :  { %v1965_v45 = vpop.f32.mrf.mxu1 }
0x2442   :  { %2145 = vpow2.f32 %v1757_v15  ;;  %v2029_v45 = vld [vmem:[%s2691_s8 + $0x8] sm:$0xff]  }
0x244d   :  { %v2144_v26 = vpop.eup %2143 }
0x244e   :  { %1329 = vrot.lane.b32.xlu0 %v2144_v26, %s2255_s26  ;;  %v2030_v26 = vld [vmem:[%s2691_s8] sm:$0xff]  }
0x244f   :  { %v2146_v28 = vpop.eup %2145 }
0x2450   :  { %v1320_v29 = vadd.f32 1.0, %v2146_v28 }
0x2452   :  { %2147 = vrcp.f32 %v1320_v29  ;;  %v2031_v29 = vld [vmem:[%s2693_s10 + $0x38] sm:$0xff]  }
0x245f   :  { %v2148_v30 = vpop.eup %2147 }
0x2460   :  { %v1327_v34 = vmul.f32 %v2148_v30, %v1325_v33 }
0x24c0   :  { %v1330_v17 = vpop.permute.xlu0 %1329 }
0x24c1   :  { %v1332_v32 = vmul.f32 %v2148_v30, %v1330_v17 }
0x24c3   :  { %1334 = vrot.lane.b32.xlu1 %v1332_v32, %s2262_s4 }
0x2535   :  { %v1335_v35 = vpop.permute.xlu1 %1334 }
0x2536   :  { %v1337_v36 = vadd.f32 %v1335_v35, %v1327_v34  ;;  %v2033_v34 = vld [vmem:[%s2693_s10 + $0x28] sm:$0xff]  }
0x2538   :  { %2149 = vtanh.f32 %v1337_v36  ;;  %v1404_v55 = vrot.slane %v1337_v36, 6 }
0x2545   :  { %v2150_v37 = vpop.eup %2149 }
0x2546   :  { %1340 = vrot.lane.b32.xlu0 %v2150_v37, %s2255_s26 }
0x25b8   :  { %v1341_v38 = vpop.permute.xlu0 %1340 }
0x25b9   :  { %v1343_v39 = vmul.f32 %v2148_v30, %v1341_v38  ;;  %v2032_v30 = vld [vmem:[%s2693_s10 + $0x30] sm:$0xff]   ;;  %v2034_v38 = vld [vmem:[%s2693_s10 + $0x20] sm:$0xff]  }
0x25bb   :  { %v1344_v40 = vpack.c.bf16 %v1343_v39, %v1343_v39  ;;  %v1505_v63 = vsel %vm793_vm3, %v2588_v20, %v1343_v39 }
0x25bd   :  { %v1346_v14 = vrot.slane %v1344_v40, 1  ;;  %v2035_v40 = vld [vmem:[%s2693_s10 + $0x18] sm:$0xff]  }
0x25bf   :  { %1347 = vrot.lane.b32.xlu1 %v1346_v14, %s2262_s4  ;;  %v2036_v14 = vld [vmem:[%s2693_s10 + $0x10] sm:$0xff]  }
0x2631   :  { %v1348_v41 = vpop.permute.xlu1 %1347 }
0x2632   :  { %1971 = vmatmul.mubr.msk.bf16.vlgmr.msra.gmra.mxu0 %vm176_vm2, %v1348_v41  ;;  %v2037_v41 = vld [vmem:[%s2693_s10 + $0x8] sm:$0xff]  }
0x2633   :  { %1986 = vmatprep.mubr.msk.bf16.mxu0 %vm2260_vm0, %v2259_v0  ;;  %1983 = vmatpush3.bf16.msra.mxu0 %v2029_v45 }
0x2634   :  { %1984 = vmatprep.subr.bf16.mxu0 %v2259_v0 }
0x2637   :  { %1985 = vmatpush3.bf16.msra.mxu0 %v2030_v26 }
0x26f2   :  { %v1386_v42 = vpop.f32.mrf.mxu0 }
0x26f3   :  { %v1393_v43 = vrot.slane %v1386_v42, 4  ;;  %v2038_v42 = vld [vmem:[%s2693_s10] sm:$0xff]  }
0x26f4   :  { %v1972_v44 = vpop.f32.mrf.mxu0 }
0x26f5   :  { %v1395_v46 = vadd.f32 %v1393_v43, %v2525_v31  ;;  %v1762_v43 = vld [vmem:[%s2692_s9] ss:$0 sm:$0xff] }
0x26f6   :  { %v1389_v47 = vpop.f32.mrf.mxu0 }
0x26f7   :  { %2151 = vtanh.f32 %v1395_v46  ;;  %v1759_v50 = vmul.f32 -1.442695, %v1395_v46 }
0x26f8   :  { %v1973_v48 = vpop.f32.mrf.mxu0 }
0x26f9   :  { %2153 = vpow2.f32 %v1759_v50 }
0x2704   :  { %v2152_v49 = vpop.eup %2151 }
0x2705   :  { %1408 = vrot.lane.b32.xlu0 %v2152_v49, %s2255_s26 }
0x2706   :  { %v2154_v51 = vpop.eup %2153 }
0x2707   :  { %v1399_v52 = vadd.f32 1.0, %v2154_v51 }
0x2709   :  { %2155 = vrcp.f32 %v1399_v52 }
0x2716   :  { %v2156_v27 = vpop.eup %2155 }
0x2717   :  { %v1406_v56 = vmul.f32 %v2156_v27, %v1404_v55 }
0x2777   :  { %v1409_v53 = vpop.permute.xlu0 %1408 }
0x2778   :  { %v1411_v54 = vmul.f32 %v2156_v27, %v1409_v53 }
0x277a   :  { %1413 = vrot.lane.b32.xlu1 %v1411_v54, %s2262_s4  ;;  %v1766_v54 = vld [vmem:[%s2694_s11] ss:$0 sm:$0xff] }
0x27ec   :  { %v1414_v58 = vpop.permute.xlu1 %1413 }
0x27ed   :  { %v1416_v59 = vadd.f32 %v1414_v58, %v1406_v56 }
0x27ef   :  { %2157 = vtanh.f32 %v1416_v59  ;;  %v1483_v22 = vrot.slane %v1416_v59, 6 }
0x27fc   :  { %v2158_v60 = vpop.eup %2157 }
0x27fd   :  { %1419 = vrot.lane.b32.xlu0 %v2158_v60, %s2255_s26 }
0x286f   :  { %v1420_v61 = vpop.permute.xlu0 %1419 }
0x2870   :  { %v1422_v62 = vmul.f32 %v2156_v27, %v1420_v61 }
0x2872   :  { %v1423_v2 = vpack.c.bf16 %v1422_v62, %v1422_v62  ;;  %v1506_v3 = vsel %vm795_vm4, %v1505_v63, %v1422_v62 }
0x2874   :  { %v1425_v4 = vrot.slane %v1423_v2, 2 }
0x2876   :  { %1426 = vrot.lane.b32.xlu1 %v1425_v4, %s2262_s4 }
0x28e8   :  { %v1427_v5 = vpop.permute.xlu1 %1426 }
0x28e9   :  { %1979 = vmatmul.mubr.msk.bf16.vlgmr.msra.gmra.mxu1 %vm176_vm2, %v1427_v5 }
0x28ea   :  { %2006 = vmatprep.mubr.msk.bf16.mxu1 %vm2260_vm0, %v2259_v0  ;;  %1991 = vmatpush3.bf16.msra.mxu1 %v2031_v29 }
0x28eb   :  { %1992 = vmatprep.subr.bf16.mxu1 %v2259_v0 }
0x28ee   :  { %1993 = vmatpush3.bf16.msra.mxu1 %v2032_v30 }
0x28ef   :  { %1994 = vmatprep.subr.bf16.mxu1 %v2259_v0 }
0x28f2   :  { %1995 = vmatpush3.bf16.msra.mxu1 %v2033_v34 }
0x28f3   :  { %1996 = vmatprep.subr.bf16.mxu1 %v2259_v0 }
0x28f6   :  { %1997 = vmatpush3.bf16.msra.mxu1 %v2034_v38 }
0x28f7   :  { %1998 = vmatprep.subr.bf16.mxu1 %v2259_v0 }
0x28fa   :  { %1999 = vmatpush3.bf16.msra.mxu1 %v2035_v40 }
0x28fb   :  { %2000 = vmatprep.subr.bf16.mxu1 %v2259_v0 }
0x28fe   :  { %2001 = vmatpush3.bf16.msra.mxu1 %v2036_v14 }
0x28ff   :  { %2002 = vmatprep.subr.bf16.mxu1 %v2259_v0 }
0x2902   :  { %2003 = vmatpush3.bf16.msra.mxu1 %v2037_v41 }
0x2903   :  { %2004 = vmatprep.subr.bf16.mxu1 %v2259_v0 }
0x2906   :  { %2005 = vmatpush3.bf16.msra.mxu1 %v2038_v42 }
0x29a9   :  { %v1465_v8 = vpop.f32.mrf.mxu1 }
0x29aa   :  { %v1472_v9 = vrot.slane %v1465_v8, 2 }
0x29ab   :  { %v1980_v10 = vpop.f32.mrf.mxu1 }
0x29ac   :  { %v1474_v11 = vadd.f32 %v1472_v9, %v2525_v31  ;;  %v1509_v31 = vld [vmem:[%s2684_s1 + $0x8] sm:$0xff] }
0x29ad   :  { %v1468_v13 = vpop.f32.mrf.mxu1 }
0x29ae   :  { %2159 = vtanh.f32 %v1474_v11  ;;  %v1761_v18 = vmul.f32 -1.442695, %v1474_v11 }
0x29af   :  { %v1981_v12 = vpop.f32.mrf.mxu1 }
0x29b0   :  { %2161 = vpow2.f32 %v1761_v18 }
0x29bb   :  { %v2160_v16 = vpop.eup %2159 }
0x29bc   :  { %1487 = vrot.lane.b32.xlu0 %v2160_v16, %s2255_s26 }
0x29bd   :  { %v2162_v19 = vpop.eup %2161 }
0x29be   :  { %v1478_v20 = vadd.f32 1.0, %v2162_v19 }
0x29c0   :  { %1512 = vperm.xlu0 %2020, %v1508_v6   ;;  %2163 = vrcp.f32 %v1478_v20 }
0x29cd   :  { %v2164_v7 = vpop.eup %2163 }
0x29ce   :  { %v1485_v23 = vmul.f32 %v2164_v7, %v1483_v22 }
0x2a2e   :  { %v1488_v21 = vpop.permute.xlu0 %1487 }
0x2a2f   :  { %v1490_v1 = vmul.f32 %v2164_v7, %v1488_v21 }
0x2a31   :  { %1492 = vrot.lane.b32.xlu1 %v1490_v1, %s2262_s4 }
0x2a35   :  { %1517 = vperm.xlu1 %2021, %v1509_v31  }
0x2a3b   :  { %v1513_v32 = vpop.permute.xlu0 %1512 }
0x2a3c   :  { %v1520_v36 = vmul.f32 %v1513_v32, %v2574_v57 }
0x2aa3   :  { %v1493_v24 = vpop.permute.xlu1 %1492 }
0x2aa4   :  { %v1495_v25 = vadd.f32 %v1493_v24, %v1485_v23 }
0x2aa6   :  { %2165 = vtanh.f32 %v1495_v25 }
0x2ab0   :  { %v1518_v28 = vpop.permute.xlu1 %1517 }
0x2ab3   :  { %v2166_v15 = vpop.eup %2165 }
0x2ab4   :  { %1498 = vrot.lane.b32.xlu1 %v2166_v15, %s2255_s26 }
0x2b26   :  { %v1499_v17 = vpop.permute.xlu1 %1498 }
0x2b27   :  { %v1501_v33 = vmul.f32 %v2164_v7, %v1499_v17 }
0x2b29   :  { %v1507_v35 = vsel %vm797_vm5, %v1506_v3, %v1501_v33 }
0x2b2a   :  { %v1521_v37 = vmul.f32 %v1518_v28, %v1507_v35 }
0x2b2c   :  { %v1544_v39 = vpack.c.bf16 %v1521_v37, %v1520_v36 }
0x2b2e   :  { %1552 = vrot.lane.b32.xlu0 %v1544_v39, %s2262_s4 }
0x2ba0   :  { %v1553_v57 = vpop.permute.xlu0 %1552 }
0x2ba1   :  { %1987 = vmatmul.mubr.msk.bf16.vlgmr.msra.gmra.mxu0 %vm176_vm2, %v1553_v57 }
0x2c61   :  { %v1603_v44 = vpop.f32.mrf.mxu0 }
0x2c62   :  { %v1604_v46 = vadd.f32 %v1762_v43, %v1603_v44 }
0x2c63   :  { %v1988_v47 = vpop.f32.mrf.mxu0 }
0x2c64   :  { %v1612_v49 = vmul.f32 0.01, %v1604_v46  ;;  %vm1610_vm6 = vcmp.ge.f32.partialorder %v1604_v46, 0.0 }
0x2c65   :  { %v1606_v48 = vpop.f32.mrf.mxu0 }
0x2c66   :  { %v1607_v50 = vadd.f32 %v1762_v43, %v1606_v48  ;;  %v1614_v0 = vsel %vm1610_vm6, %v1604_v46, %v1612_v49 }
0x2c67   :  { %v1989_v51 = vpop.f32.mrf.mxu0 }
0x2c68   :  { %vm1611_vm7 = vcmp.ge.f32.partialorder %v1607_v50, 0.0  ;;  %v1613_v52 = vmul.f32 0.01, %v1607_v50 }
0x2c6a   :  { %v1615_v27 = vsel %vm1611_vm7, %v1607_v50, %v1613_v52 }
0x2c6b   :  { %v1616_v53 = vpack.c.bf16 %v1615_v27, %v1614_v0 }
0x2c6d   :  { %2007 = vmatmul.mubr.bf16.vlgmr.msra.gmra.mxu1 %v1616_v53 }
0x2d2d   :  { %v1705_v55 = vpop.f32.mrf.mxu1 }
0x2d2e   :  { %v1706_v56 = vadd.f32 %v1766_v54, %v1705_v55 }
0x2d2f   :  { %v2008_v58 = vpop.f32.mrf.mxu1 }
0x2d30   :  { %1712 = vst [vmem:[%s2695_s12] sm:$0xff] %v1706_v56 }
0x2d31   :  { %v1708_v59 = vpop.f32.mrf.mxu1 }
0x2d32   :  { %v1709_v60 = vadd.f32 %v1766_v54, %v1708_v59 }
0x2d33   :  { %v2009_v61 = vpop.f32.mrf.mxu1 }
0x2d34   :  { %1713 = vst [vmem:[%s2695_s12 + $0x8] sm:$0xff] %v1709_v60 }
0x2d35   :  { %1718 = vsyncpa [#allocation3], 1 }
0x2d36   :  { %1719 = vsyncpa [#allocation5], 1 }
0x2d37   :  { %1720 = vsyncpa [#allocation8], 1 }

</bundles_post_ra>
